<compile_context>
chip_gen: v6e
topology: v6e:2x2x1
jax: 0.10.0
libtpu: 0.0.40
codegen_flags: <defaults>
</compile_context>

<pallas_src>
import jax
import jax.numpy as jnp
from jax import lax
from jax.experimental import pallas as pl
from jax.experimental.pallas import tpu as pltpu


def _lstm_kernel(idx_ref, emb_ref, wih_ref, whh_ref, b_ref, wd_ref, bd_ref,
                 out_ref, x_ref, gx_ref):
    """Single fused forward: embed -> LSTM -> dense -> sigmoid.

    idx_ref : SMEM (BP, T) int32   token ids (padded batch rows hold token 0)
    emb_ref : VMEM (V, E)  f32     embedding table
    wih_ref : VMEM (E, G)  f32     input->gate weights, gates packed [i|f|g|o]
    whh_ref : VMEM (H, G)  f32     hidden->gate weights (packed)
    b_ref   : VMEM (1, G)  f32     combined b_ih + b_hh (packed)
    wd_ref  : VMEM (H, CP) f32     dense weights (cols C..CP zero)
    bd_ref  : VMEM (1, CP) f32     dense bias (lane padded)
    out_ref : VMEM (BP, CP) f32    sigmoid(dense(h_T)); valid block [:B, :C]
    x_ref   : VMEM scratch (T*BP, E)  gathered embeddings, rows ordered (t, b)
    gx_ref  : VMEM scratch (T*BP, G)  hoisted input projection + bias
    """
    BP, T = idx_ref.shape
    H = whh_ref.shape[0]

    # ---- Fused embedding gather: SMEM token id -> VMEM table row copy. ----
    # Static python loop (T*BP = 64 tiny row copies); token ids are scalar
    # SMEM reads, the row copies are dynamic-sublane VMEM loads that sit off
    # the recurrence's serial chain.
    for r in range(T * BP):
        t, b = divmod(r, BP)
        tok = idx_ref[b, t]
        x_ref[pl.ds(r, 1), :] = emb_ref[pl.ds(tok, 1), :]

    # ---- Input projection for ALL timesteps as one batched MXU matmul ----
    # (off the serial recurrence path); bias folded in once.
    gx_ref[...] = (
        jnp.dot(x_ref[...], wih_ref[...], preferred_element_type=jnp.float32)
        + b_ref[...])

    # Packed W_hh is (H, 4H) f32 = 4 vregs at H=32: cheap to keep live across
    # the fully unrolled recurrence (saves T redundant VMEM reads).
    whh = whh_ref[...]

    def step(t, carry):
        h, c = carry
        row = pl.multiple_of(t * BP, BP)
        gates = gx_ref[pl.ds(row, BP), :] + jnp.dot(
            h, whh, preferred_element_type=jnp.float32)         # (BP, G)
        # PyTorch gate order, packed lanes: [ i | f | g | o ], each H wide.
        sig = jax.nn.sigmoid(gates)          # 1 EUP pass over packed gates
        g_act = jnp.tanh(gates[:, 2 * H:3 * H])                 # 1 EUP pass
        i_act = sig[:, 0 * H:1 * H]
        f_act = sig[:, 1 * H:2 * H]
        o_act = sig[:, 3 * H:4 * H]
        c_new = f_act * c + i_act * g_act
        h_new = o_act * jnp.tanh(c_new)                         # 1 EUP pass
        return h_new, c_new

    h0 = jnp.zeros((BP, H), jnp.float32)
    c0 = jnp.zeros((BP, H), jnp.float32)
    # h/c live as loop-carried vregs; T is static so fully unroll.
    h_last, _ = lax.fori_loop(0, T, step, (h0, c0), unroll=True)

    # Dense on the last hidden state + sigmoid; (BP, CP) lane-dense store.
    logits = jnp.dot(h_last, wd_ref[...],
                     preferred_element_type=jnp.float32) + bd_ref[...]
    out_ref[...] = jax.nn.sigmoid(logits)


def make_lstm_forward(embed_table, w_ih, w_hh, b_ih, b_hh, w_dense, b_dense):
    """Pack/pad the parameters ONCE; return a jitted forward(indices)."""
    E = embed_table.shape[1]
    H = w_hh.shape[0]                    # weights stored transposed as (H, 4H)
    assert w_hh.shape[1] == 4 * H
    assert w_ih.shape == (E, 4 * H)
    C = w_dense.shape[1]                 # dense stored transposed as (H, C)

    G = 128 * pl.cdiv(4 * H, 128)        # packed gate width (lane multiple)
    CP = 128 * pl.cdiv(C, 128)           # lane-dense output width
    f32 = jnp.float32

    # Gates packed contiguously [i|f|g|o]; only trailing lanes (>= 4H) padded.
    wih_p = jnp.zeros((E, G), f32).at[:, :4 * H].set(w_ih.astype(f32))
    whh_p = jnp.zeros((H, G), f32).at[:, :4 * H].set(w_hh.astype(f32))
    b_p = (jnp.zeros((1, G), f32)
           .at[:, :4 * H].set((b_ih + b_hh).astype(f32).reshape(1, 4 * H)))
    wd_p = jnp.zeros((H, CP), f32).at[:, :C].set(w_dense.astype(f32))
    bd_p = (jnp.zeros((1, CP), f32)
            .at[:, :C].set(b_dense.astype(f32).reshape(1, C)))
    emb = embed_table.astype(f32)

    # Materialize now, device resident — never rebuilt per call.
    emb, wih_p, whh_p, b_p, wd_p, bd_p = jax.block_until_ready(
        (emb, wih_p, whh_p, b_p, wd_p, bd_p))

    vmem = pl.BlockSpec(memory_space=pltpu.MemorySpace.VMEM)
    smem = pl.BlockSpec(memory_space=pltpu.MemorySpace.SMEM)

    @jax.jit
    def forward(indices):
        B, T = indices.shape
        BP = 8 * pl.cdiv(B, 8)           # sublane padding of the batch
        # Pad batch rows with token 0 (their outputs are sliced away below).
        idx_p = (jnp.zeros((BP, T), jnp.int32)
                 .at[:B, :].set(indices.astype(jnp.int32)))

        out_p = pl.pallas_call(
            _lstm_kernel,
            out_shape=jax.ShapeDtypeStruct((BP, CP), f32),
            in_specs=[smem, vmem, vmem, vmem, vmem, vmem, vmem],
            out_specs=vmem,
            scratch_shapes=[pltpu.VMEM((T * BP, E), f32),    # gathered x
                            pltpu.VMEM((T * BP, G), f32)],   # gates_x
        )(idx_p, emb, wih_p, whh_p, b_p, wd_p, bd_p)
        return out_p[:B, :C]

    return forward


if __name__ == "__main__":
    # Small shapes consistent with the module's forward.
    batchsize = 4
    maxsentencelength = 8
    embedding_dim = 32
    hiddenlayers = 32
    numclasses = 1
    maxwords = 64

    key = jax.random.PRNGKey(0)
    k_emb, k_wih, k_whh, k_bih, k_bhh, k_wd, k_bd, k_idx = jax.random.split(key, 8)

    # Deterministic parameter init (nn.Embedding / nn.LSTM / nn.Linear shapes;
    # LSTM/Linear weights kept in transposed "(in, out)" layout).
    embed_table = jax.random.normal(k_emb, (maxwords + 1, embedding_dim),
                                    dtype=jnp.float32)
    w_ih = 0.1 * jax.random.normal(k_wih, (embedding_dim, 4 * hiddenlayers),
                                   dtype=jnp.float32)
    w_hh = 0.1 * jax.random.normal(k_whh, (hiddenlayers, 4 * hiddenlayers),
                                   dtype=jnp.float32)
    b_ih = 0.1 * jax.random.normal(k_bih, (4 * hiddenlayers,), dtype=jnp.float32)
    b_hh = 0.1 * jax.random.normal(k_bhh, (4 * hiddenlayers,), dtype=jnp.float32)
    w_dense = 0.1 * jax.random.normal(k_wd, (hiddenlayers, numclasses),
                                      dtype=jnp.float32)
    b_dense = 0.1 * jax.random.normal(k_bd, (numclasses,), dtype=jnp.float32)

    # Token indices (like train_indices[:batchsize, :]).
    indices = jax.random.randint(k_idx, (batchsize, maxsentencelength),
                                 0, maxwords + 1, dtype=jnp.int32)

    forward = make_lstm_forward(embed_table, w_ih, w_hh, b_ih, b_hh,
                                w_dense, b_dense)
    out = jax.block_until_ready(forward(indices))

    # Lightweight correctness check against a pure-JAX f32 reference.
    def ref_forward():
        x = jnp.take(embed_table, indices, axis=0)          # (B, T, E)
        h = jnp.zeros((batchsize, hiddenlayers), jnp.float32)
        c = jnp.zeros((batchsize, hiddenlayers), jnp.float32)
        H = hiddenlayers
        for t in range(maxsentencelength):
            gates = x[:, t, :] @ w_ih + h @ w_hh + (b_ih + b_hh)
            i_g = jax.nn.sigmoid(gates[:, 0:H])
            f_g = jax.nn.sigmoid(gates[:, H:2 * H])
            g_g = jnp.tanh(gates[:, 2 * H:3 * H])
            o_g = jax.nn.sigmoid(gates[:, 3 * H:4 * H])
            c = f_g * c + i_g * g_g
            h = o_g * jnp.tanh(c)
        return jax.nn.sigmoid(h @ w_dense + b_dense)

    ref = ref_forward()
    assert out.shape == (batchsize, numclasses)
    assert jnp.allclose(out, ref, atol=1e-4, rtol=1e-4), (
        float(jnp.max(jnp.abs(out - ref))))
    print("KERNEL_OK")
</pallas_src>

<mosaic_0001>
module attributes {stable_mosaic.version = 11 : i64} {
  func.func @_lstm_kernel(%arg0: memref<8x8xi32, #tpu.memory_space<smem>>, %arg1: memref<65x32xf32, #tpu.memory_space<vmem>>, %arg2: memref<32x128xf32, #tpu.memory_space<vmem>>, %arg3: memref<32x128xf32, #tpu.memory_space<vmem>>, %arg4: memref<1x128xf32, #tpu.memory_space<vmem>>, %arg5: memref<32x128xf32, #tpu.memory_space<vmem>>, %arg6: memref<1x128xf32, #tpu.memory_space<vmem>>, %arg7: memref<8x128xf32, #tpu.memory_space<vmem>>, %arg8: memref<64x32xf32, #tpu.memory_space<vmem>>, %arg9: memref<64x128xf32, #tpu.memory_space<vmem>>) attributes {dimension_semantics = [], scalar_prefetch = 0 : i64, scratch_operands = 2 : i64, tpu.core_type = #tpu.core_type<tc>} {
    %c0 = arith.constant 0 : index
    %c0_0 = arith.constant 0 : index
    %0 = memref.load %arg0[%c0, %c0_0] : memref<8x8xi32, #tpu.memory_space<smem>>
    %1 = arith.index_cast %0 : i32 to index
    %c0_1 = arith.constant 0 : index
    %2 = vector.load %arg1[%1, %c0_1] : memref<65x32xf32, #tpu.memory_space<vmem>>, vector<1x32xf32>
    %c0_2 = arith.constant 0 : index
    %c0_3 = arith.constant 0 : index
    %3 = vector.load %arg8[%c0_2, %c0_3] : memref<64x32xf32, #tpu.memory_space<vmem>>, vector<1x32xf32>
    tpu.vector_store %arg8[%c0_2, %c0_3], %2 {strides = array<i32>} : memref<64x32xf32, #tpu.memory_space<vmem>>, vector<1x32xf32>,
    %c1 = arith.constant 1 : index
    %c0_4 = arith.constant 0 : index
    %4 = memref.load %arg0[%c1, %c0_4] : memref<8x8xi32, #tpu.memory_space<smem>>
    %5 = arith.index_cast %4 : i32 to index
    %c0_5 = arith.constant 0 : index
    %6 = vector.load %arg1[%5, %c0_5] : memref<65x32xf32, #tpu.memory_space<vmem>>, vector<1x32xf32>
    %c1_6 = arith.constant 1 : index
    %c0_7 = arith.constant 0 : index
    %7 = vector.load %arg8[%c1_6, %c0_7] : memref<64x32xf32, #tpu.memory_space<vmem>>, vector<1x32xf32>
    tpu.vector_store %arg8[%c1_6, %c0_7], %6 {strides = array<i32>} : memref<64x32xf32, #tpu.memory_space<vmem>>, vector<1x32xf32>,
    %c2 = arith.constant 2 : index
    %c0_8 = arith.constant 0 : index
    %8 = memref.load %arg0[%c2, %c0_8] : memref<8x8xi32, #tpu.memory_space<smem>>
    %9 = arith.index_cast %8 : i32 to index
    %c0_9 = arith.constant 0 : index
    %10 = vector.load %arg1[%9, %c0_9] : memref<65x32xf32, #tpu.memory_space<vmem>>, vector<1x32xf32>
    %c2_10 = arith.constant 2 : index
    %c0_11 = arith.constant 0 : index
    %11 = vector.load %arg8[%c2_10, %c0_11] : memref<64x32xf32, #tpu.memory_space<vmem>>, vector<1x32xf32>
    tpu.vector_store %arg8[%c2_10, %c0_11], %10 {strides = array<i32>} : memref<64x32xf32, #tpu.memory_space<vmem>>, vector<1x32xf32>,
    %c3 = arith.constant 3 : index
    %c0_12 = arith.constant 0 : index
    %12 = memref.load %arg0[%c3, %c0_12] : memref<8x8xi32, #tpu.memory_space<smem>>
    %13 = arith.index_cast %12 : i32 to index
    %c0_13 = arith.constant 0 : index
    %14 = vector.load %arg1[%13, %c0_13] : memref<65x32xf32, #tpu.memory_space<vmem>>, vector<1x32xf32>
    %c3_14 = arith.constant 3 : index
    %c0_15 = arith.constant 0 : index
    %15 = vector.load %arg8[%c3_14, %c0_15] : memref<64x32xf32, #tpu.memory_space<vmem>>, vector<1x32xf32>
    tpu.vector_store %arg8[%c3_14, %c0_15], %14 {strides = array<i32>} : memref<64x32xf32, #tpu.memory_space<vmem>>, vector<1x32xf32>,
    %c4 = arith.constant 4 : index
    %c0_16 = arith.constant 0 : index
    %16 = memref.load %arg0[%c4, %c0_16] : memref<8x8xi32, #tpu.memory_space<smem>>
    %17 = arith.index_cast %16 : i32 to index
    %c0_17 = arith.constant 0 : index
    %18 = vector.load %arg1[%17, %c0_17] : memref<65x32xf32, #tpu.memory_space<vmem>>, vector<1x32xf32>
    %c4_18 = arith.constant 4 : index
    %c0_19 = arith.constant 0 : index
    %19 = vector.load %arg8[%c4_18, %c0_19] : memref<64x32xf32, #tpu.memory_space<vmem>>, vector<1x32xf32>
    tpu.vector_store %arg8[%c4_18, %c0_19], %18 {strides = array<i32>} : memref<64x32xf32, #tpu.memory_space<vmem>>, vector<1x32xf32>,
    %c5 = arith.constant 5 : index
    %c0_20 = arith.constant 0 : index
    %20 = memref.load %arg0[%c5, %c0_20] : memref<8x8xi32, #tpu.memory_space<smem>>
    %21 = arith.index_cast %20 : i32 to index
    %c0_21 = arith.constant 0 : index
    %22 = vector.load %arg1[%21, %c0_21] : memref<65x32xf32, #tpu.memory_space<vmem>>, vector<1x32xf32>
    %c5_22 = arith.constant 5 : index
    %c0_23 = arith.constant 0 : index
    %23 = vector.load %arg8[%c5_22, %c0_23] : memref<64x32xf32, #tpu.memory_space<vmem>>, vector<1x32xf32>
    tpu.vector_store %arg8[%c5_22, %c0_23], %22 {strides = array<i32>} : memref<64x32xf32, #tpu.memory_space<vmem>>, vector<1x32xf32>,
    %c6 = arith.constant 6 : index
    %c0_24 = arith.constant 0 : index
    %24 = memref.load %arg0[%c6, %c0_24] : memref<8x8xi32, #tpu.memory_space<smem>>
    %25 = arith.index_cast %24 : i32 to index
    %c0_25 = arith.constant 0 : index
    %26 = vector.load %arg1[%25, %c0_25] : memref<65x32xf32, #tpu.memory_space<vmem>>, vector<1x32xf32>
    %c6_26 = arith.constant 6 : index
    %c0_27 = arith.constant 0 : index
    %27 = vector.load %arg8[%c6_26, %c0_27] : memref<64x32xf32, #tpu.memory_space<vmem>>, vector<1x32xf32>
    tpu.vector_store %arg8[%c6_26, %c0_27], %26 {strides = array<i32>} : memref<64x32xf32, #tpu.memory_space<vmem>>, vector<1x32xf32>,
    %c7 = arith.constant 7 : index
    %c0_28 = arith.constant 0 : index
    %28 = memref.load %arg0[%c7, %c0_28] : memref<8x8xi32, #tpu.memory_space<smem>>
    %29 = arith.index_cast %28 : i32 to index
    %c0_29 = arith.constant 0 : index
    %30 = vector.load %arg1[%29, %c0_29] : memref<65x32xf32, #tpu.memory_space<vmem>>, vector<1x32xf32>
    %c7_30 = arith.constant 7 : index
    %c0_31 = arith.constant 0 : index
    %31 = vector.load %arg8[%c7_30, %c0_31] : memref<64x32xf32, #tpu.memory_space<vmem>>, vector<1x32xf32>
    tpu.vector_store %arg8[%c7_30, %c0_31], %30 {strides = array<i32>} : memref<64x32xf32, #tpu.memory_space<vmem>>, vector<1x32xf32>,
    %c0_32 = arith.constant 0 : index
    %c1_33 = arith.constant 1 : index
    %32 = memref.load %arg0[%c0_32, %c1_33] : memref<8x8xi32, #tpu.memory_space<smem>>
    %33 = arith.index_cast %32 : i32 to index
    %c0_34 = arith.constant 0 : index
    %34 = vector.load %arg1[%33, %c0_34] : memref<65x32xf32, #tpu.memory_space<vmem>>, vector<1x32xf32>
    %c8 = arith.constant 8 : index
    %c0_35 = arith.constant 0 : index
    %35 = vector.load %arg8[%c8, %c0_35] : memref<64x32xf32, #tpu.memory_space<vmem>>, vector<1x32xf32>
    tpu.vector_store %arg8[%c8, %c0_35], %34 {strides = array<i32>} : memref<64x32xf32, #tpu.memory_space<vmem>>, vector<1x32xf32>,
    %c1_36 = arith.constant 1 : index
    %c1_37 = arith.constant 1 : index
    %36 = memref.load %arg0[%c1_36, %c1_37] : memref<8x8xi32, #tpu.memory_space<smem>>
    %37 = arith.index_cast %36 : i32 to index
    %c0_38 = arith.constant 0 : index
    %38 = vector.load %arg1[%37, %c0_38] : memref<65x32xf32, #tpu.memory_space<vmem>>, vector<1x32xf32>
    %c9 = arith.constant 9 : index
    %c0_39 = arith.constant 0 : index
    %39 = vector.load %arg8[%c9, %c0_39] : memref<64x32xf32, #tpu.memory_space<vmem>>, vector<1x32xf32>
    tpu.vector_store %arg8[%c9, %c0_39], %38 {strides = array<i32>} : memref<64x32xf32, #tpu.memory_space<vmem>>, vector<1x32xf32>,
    %c2_40 = arith.constant 2 : index
    %c1_41 = arith.constant 1 : index
    %40 = memref.load %arg0[%c2_40, %c1_41] : memref<8x8xi32, #tpu.memory_space<smem>>
    %41 = arith.index_cast %40 : i32 to index
    %c0_42 = arith.constant 0 : index
    %42 = vector.load %arg1[%41, %c0_42] : memref<65x32xf32, #tpu.memory_space<vmem>>, vector<1x32xf32>
    %c10 = arith.constant 10 : index
    %c0_43 = arith.constant 0 : index
    %43 = vector.load %arg8[%c10, %c0_43] : memref<64x32xf32, #tpu.memory_space<vmem>>, vector<1x32xf32>
    tpu.vector_store %arg8[%c10, %c0_43], %42 {strides = array<i32>} : memref<64x32xf32, #tpu.memory_space<vmem>>, vector<1x32xf32>,
    %c3_44 = arith.constant 3 : index
    %c1_45 = arith.constant 1 : index
    %44 = memref.load %arg0[%c3_44, %c1_45] : memref<8x8xi32, #tpu.memory_space<smem>>
    %45 = arith.index_cast %44 : i32 to index
    %c0_46 = arith.constant 0 : index
    %46 = vector.load %arg1[%45, %c0_46] : memref<65x32xf32, #tpu.memory_space<vmem>>, vector<1x32xf32>
    %c11 = arith.constant 11 : index
    %c0_47 = arith.constant 0 : index
    %47 = vector.load %arg8[%c11, %c0_47] : memref<64x32xf32, #tpu.memory_space<vmem>>, vector<1x32xf32>
    tpu.vector_store %arg8[%c11, %c0_47], %46 {strides = array<i32>} : memref<64x32xf32, #tpu.memory_space<vmem>>, vector<1x32xf32>,
    %c4_48 = arith.constant 4 : index
    %c1_49 = arith.constant 1 : index
    %48 = memref.load %arg0[%c4_48, %c1_49] : memref<8x8xi32, #tpu.memory_space<smem>>
    %49 = arith.index_cast %48 : i32 to index
    %c0_50 = arith.constant 0 : index
    %50 = vector.load %arg1[%49, %c0_50] : memref<65x32xf32, #tpu.memory_space<vmem>>, vector<1x32xf32>
    %c12 = arith.constant 12 : index
    %c0_51 = arith.constant 0 : index
    %51 = vector.load %arg8[%c12, %c0_51] : memref<64x32xf32, #tpu.memory_space<vmem>>, vector<1x32xf32>
    tpu.vector_store %arg8[%c12, %c0_51], %50 {strides = array<i32>} : memref<64x32xf32, #tpu.memory_space<vmem>>, vector<1x32xf32>,
    %c5_52 = arith.constant 5 : index
    %c1_53 = arith.constant 1 : index
    %52 = memref.load %arg0[%c5_52, %c1_53] : memref<8x8xi32, #tpu.memory_space<smem>>
    %53 = arith.index_cast %52 : i32 to index
    %c0_54 = arith.constant 0 : index
    %54 = vector.load %arg1[%53, %c0_54] : memref<65x32xf32, #tpu.memory_space<vmem>>, vector<1x32xf32>
    %c13 = arith.constant 13 : index
    %c0_55 = arith.constant 0 : index
    %55 = vector.load %arg8[%c13, %c0_55] : memref<64x32xf32, #tpu.memory_space<vmem>>, vector<1x32xf32>
    tpu.vector_store %arg8[%c13, %c0_55], %54 {strides = array<i32>} : memref<64x32xf32, #tpu.memory_space<vmem>>, vector<1x32xf32>,
    %c6_56 = arith.constant 6 : index
    %c1_57 = arith.constant 1 : index
    %56 = memref.load %arg0[%c6_56, %c1_57] : memref<8x8xi32, #tpu.memory_space<smem>>
    %57 = arith.index_cast %56 : i32 to index
    %c0_58 = arith.constant 0 : index
    %58 = vector.load %arg1[%57, %c0_58] : memref<65x32xf32, #tpu.memory_space<vmem>>, vector<1x32xf32>
    %c14 = arith.constant 14 : index
    %c0_59 = arith.constant 0 : index
    %59 = vector.load %arg8[%c14, %c0_59] : memref<64x32xf32, #tpu.memory_space<vmem>>, vector<1x32xf32>
    tpu.vector_store %arg8[%c14, %c0_59], %58 {strides = array<i32>} : memref<64x32xf32, #tpu.memory_space<vmem>>, vector<1x32xf32>,
    %c7_60 = arith.constant 7 : index
    %c1_61 = arith.constant 1 : index
    %60 = memref.load %arg0[%c7_60, %c1_61] : memref<8x8xi32, #tpu.memory_space<smem>>
    %61 = arith.index_cast %60 : i32 to index
    %c0_62 = arith.constant 0 : index
    %62 = vector.load %arg1[%61, %c0_62] : memref<65x32xf32, #tpu.memory_space<vmem>>, vector<1x32xf32>
    %c15 = arith.constant 15 : index
    %c0_63 = arith.constant 0 : index
    %63 = vector.load %arg8[%c15, %c0_63] : memref<64x32xf32, #tpu.memory_space<vmem>>, vector<1x32xf32>
    tpu.vector_store %arg8[%c15, %c0_63], %62 {strides = array<i32>} : memref<64x32xf32, #tpu.memory_space<vmem>>, vector<1x32xf32>,
    %c0_64 = arith.constant 0 : index
    %c2_65 = arith.constant 2 : index
    %64 = memref.load %arg0[%c0_64, %c2_65] : memref<8x8xi32, #tpu.memory_space<smem>>
    %65 = arith.index_cast %64 : i32 to index
    %c0_66 = arith.constant 0 : index
    %66 = vector.load %arg1[%65, %c0_66] : memref<65x32xf32, #tpu.memory_space<vmem>>, vector<1x32xf32>
    %c16 = arith.constant 16 : index
    %c0_67 = arith.constant 0 : index
    %67 = vector.load %arg8[%c16, %c0_67] : memref<64x32xf32, #tpu.memory_space<vmem>>, vector<1x32xf32>
    tpu.vector_store %arg8[%c16, %c0_67], %66 {strides = array<i32>} : memref<64x32xf32, #tpu.memory_space<vmem>>, vector<1x32xf32>,
    %c1_68 = arith.constant 1 : index
    %c2_69 = arith.constant 2 : index
    %68 = memref.load %arg0[%c1_68, %c2_69] : memref<8x8xi32, #tpu.memory_space<smem>>
    %69 = arith.index_cast %68 : i32 to index
    %c0_70 = arith.constant 0 : index
    %70 = vector.load %arg1[%69, %c0_70] : memref<65x32xf32, #tpu.memory_space<vmem>>, vector<1x32xf32>
    %c17 = arith.constant 17 : index
    %c0_71 = arith.constant 0 : index
    %71 = vector.load %arg8[%c17, %c0_71] : memref<64x32xf32, #tpu.memory_space<vmem>>, vector<1x32xf32>
    tpu.vector_store %arg8[%c17, %c0_71], %70 {strides = array<i32>} : memref<64x32xf32, #tpu.memory_space<vmem>>, vector<1x32xf32>,
    %c2_72 = arith.constant 2 : index
    %c2_73 = arith.constant 2 : index
    %72 = memref.load %arg0[%c2_72, %c2_73] : memref<8x8xi32, #tpu.memory_space<smem>>
    %73 = arith.index_cast %72 : i32 to index
    %c0_74 = arith.constant 0 : index
    %74 = vector.load %arg1[%73, %c0_74] : memref<65x32xf32, #tpu.memory_space<vmem>>, vector<1x32xf32>
    %c18 = arith.constant 18 : index
    %c0_75 = arith.constant 0 : index
    %75 = vector.load %arg8[%c18, %c0_75] : memref<64x32xf32, #tpu.memory_space<vmem>>, vector<1x32xf32>
    tpu.vector_store %arg8[%c18, %c0_75], %74 {strides = array<i32>} : memref<64x32xf32, #tpu.memory_space<vmem>>, vector<1x32xf32>,
    %c3_76 = arith.constant 3 : index
    %c2_77 = arith.constant 2 : index
    %76 = memref.load %arg0[%c3_76, %c2_77] : memref<8x8xi32, #tpu.memory_space<smem>>
    %77 = arith.index_cast %76 : i32 to index
    %c0_78 = arith.constant 0 : index
    %78 = vector.load %arg1[%77, %c0_78] : memref<65x32xf32, #tpu.memory_space<vmem>>, vector<1x32xf32>
    %c19 = arith.constant 19 : index
    %c0_79 = arith.constant 0 : index
    %79 = vector.load %arg8[%c19, %c0_79] : memref<64x32xf32, #tpu.memory_space<vmem>>, vector<1x32xf32>
    tpu.vector_store %arg8[%c19, %c0_79], %78 {strides = array<i32>} : memref<64x32xf32, #tpu.memory_space<vmem>>, vector<1x32xf32>,
    %c4_80 = arith.constant 4 : index
    %c2_81 = arith.constant 2 : index
    %80 = memref.load %arg0[%c4_80, %c2_81] : memref<8x8xi32, #tpu.memory_space<smem>>
    %81 = arith.index_cast %80 : i32 to index
    %c0_82 = arith.constant 0 : index
    %82 = vector.load %arg1[%81, %c0_82] : memref<65x32xf32, #tpu.memory_space<vmem>>, vector<1x32xf32>
    %c20 = arith.constant 20 : index
    %c0_83 = arith.constant 0 : index
    %83 = vector.load %arg8[%c20, %c0_83] : memref<64x32xf32, #tpu.memory_space<vmem>>, vector<1x32xf32>
    tpu.vector_store %arg8[%c20, %c0_83], %82 {strides = array<i32>} : memref<64x32xf32, #tpu.memory_space<vmem>>, vector<1x32xf32>,
    %c5_84 = arith.constant 5 : index
    %c2_85 = arith.constant 2 : index
    %84 = memref.load %arg0[%c5_84, %c2_85] : memref<8x8xi32, #tpu.memory_space<smem>>
    %85 = arith.index_cast %84 : i32 to index
    %c0_86 = arith.constant 0 : index
    %86 = vector.load %arg1[%85, %c0_86] : memref<65x32xf32, #tpu.memory_space<vmem>>, vector<1x32xf32>
    %c21 = arith.constant 21 : index
    %c0_87 = arith.constant 0 : index
    %87 = vector.load %arg8[%c21, %c0_87] : memref<64x32xf32, #tpu.memory_space<vmem>>, vector<1x32xf32>
    tpu.vector_store %arg8[%c21, %c0_87], %86 {strides = array<i32>} : memref<64x32xf32, #tpu.memory_space<vmem>>, vector<1x32xf32>,
    %c6_88 = arith.constant 6 : index
    %c2_89 = arith.constant 2 : index
    %88 = memref.load %arg0[%c6_88, %c2_89] : memref<8x8xi32, #tpu.memory_space<smem>>
    %89 = arith.index_cast %88 : i32 to index
    %c0_90 = arith.constant 0 : index
    %90 = vector.load %arg1[%89, %c0_90] : memref<65x32xf32, #tpu.memory_space<vmem>>, vector<1x32xf32>
    %c22 = arith.constant 22 : index
    %c0_91 = arith.constant 0 : index
    %91 = vector.load %arg8[%c22, %c0_91] : memref<64x32xf32, #tpu.memory_space<vmem>>, vector<1x32xf32>
    tpu.vector_store %arg8[%c22, %c0_91], %90 {strides = array<i32>} : memref<64x32xf32, #tpu.memory_space<vmem>>, vector<1x32xf32>,
    %c7_92 = arith.constant 7 : index
    %c2_93 = arith.constant 2 : index
    %92 = memref.load %arg0[%c7_92, %c2_93] : memref<8x8xi32, #tpu.memory_space<smem>>
    %93 = arith.index_cast %92 : i32 to index
    %c0_94 = arith.constant 0 : index
    %94 = vector.load %arg1[%93, %c0_94] : memref<65x32xf32, #tpu.memory_space<vmem>>, vector<1x32xf32>
    %c23 = arith.constant 23 : index
    %c0_95 = arith.constant 0 : index
    %95 = vector.load %arg8[%c23, %c0_95] : memref<64x32xf32, #tpu.memory_space<vmem>>, vector<1x32xf32>
    tpu.vector_store %arg8[%c23, %c0_95], %94 {strides = array<i32>} : memref<64x32xf32, #tpu.memory_space<vmem>>, vector<1x32xf32>,
    %c0_96 = arith.constant 0 : index
    %c3_97 = arith.constant 3 : index
    %96 = memref.load %arg0[%c0_96, %c3_97] : memref<8x8xi32, #tpu.memory_space<smem>>
    %97 = arith.index_cast %96 : i32 to index
    %c0_98 = arith.constant 0 : index
    %98 = vector.load %arg1[%97, %c0_98] : memref<65x32xf32, #tpu.memory_space<vmem>>, vector<1x32xf32>
    %c24 = arith.constant 24 : index
    %c0_99 = arith.constant 0 : index
    %99 = vector.load %arg8[%c24, %c0_99] : memref<64x32xf32, #tpu.memory_space<vmem>>, vector<1x32xf32>
    tpu.vector_store %arg8[%c24, %c0_99], %98 {strides = array<i32>} : memref<64x32xf32, #tpu.memory_space<vmem>>, vector<1x32xf32>,
    %c1_100 = arith.constant 1 : index
    %c3_101 = arith.constant 3 : index
    %100 = memref.load %arg0[%c1_100, %c3_101] : memref<8x8xi32, #tpu.memory_space<smem>>
    %101 = arith.index_cast %100 : i32 to index
    %c0_102 = arith.constant 0 : index
    %102 = vector.load %arg1[%101, %c0_102] : memref<65x32xf32, #tpu.memory_space<vmem>>, vector<1x32xf32>
    %c25 = arith.constant 25 : index
    %c0_103 = arith.constant 0 : index
    %103 = vector.load %arg8[%c25, %c0_103] : memref<64x32xf32, #tpu.memory_space<vmem>>, vector<1x32xf32>
    tpu.vector_store %arg8[%c25, %c0_103], %102 {strides = array<i32>} : memref<64x32xf32, #tpu.memory_space<vmem>>, vector<1x32xf32>,
    %c2_104 = arith.constant 2 : index
    %c3_105 = arith.constant 3 : index
    %104 = memref.load %arg0[%c2_104, %c3_105] : memref<8x8xi32, #tpu.memory_space<smem>>
    %105 = arith.index_cast %104 : i32 to index
    %c0_106 = arith.constant 0 : index
    %106 = vector.load %arg1[%105, %c0_106] : memref<65x32xf32, #tpu.memory_space<vmem>>, vector<1x32xf32>
    %c26 = arith.constant 26 : index
    %c0_107 = arith.constant 0 : index
    %107 = vector.load %arg8[%c26, %c0_107] : memref<64x32xf32, #tpu.memory_space<vmem>>, vector<1x32xf32>
    tpu.vector_store %arg8[%c26, %c0_107], %106 {strides = array<i32>} : memref<64x32xf32, #tpu.memory_space<vmem>>, vector<1x32xf32>,
    %c3_108 = arith.constant 3 : index
    %c3_109 = arith.constant 3 : index
    %108 = memref.load %arg0[%c3_108, %c3_109] : memref<8x8xi32, #tpu.memory_space<smem>>
    %109 = arith.index_cast %108 : i32 to index
    %c0_110 = arith.constant 0 : index
    %110 = vector.load %arg1[%109, %c0_110] : memref<65x32xf32, #tpu.memory_space<vmem>>, vector<1x32xf32>
    %c27 = arith.constant 27 : index
    %c0_111 = arith.constant 0 : index
    %111 = vector.load %arg8[%c27, %c0_111] : memref<64x32xf32, #tpu.memory_space<vmem>>, vector<1x32xf32>
    tpu.vector_store %arg8[%c27, %c0_111], %110 {strides = array<i32>} : memref<64x32xf32, #tpu.memory_space<vmem>>, vector<1x32xf32>,
    %c4_112 = arith.constant 4 : index
    %c3_113 = arith.constant 3 : index
    %112 = memref.load %arg0[%c4_112, %c3_113] : memref<8x8xi32, #tpu.memory_space<smem>>
    %113 = arith.index_cast %112 : i32 to index
    %c0_114 = arith.constant 0 : index
    %114 = vector.load %arg1[%113, %c0_114] : memref<65x32xf32, #tpu.memory_space<vmem>>, vector<1x32xf32>
    %c28 = arith.constant 28 : index
    %c0_115 = arith.constant 0 : index
    %115 = vector.load %arg8[%c28, %c0_115] : memref<64x32xf32, #tpu.memory_space<vmem>>, vector<1x32xf32>
    tpu.vector_store %arg8[%c28, %c0_115], %114 {strides = array<i32>} : memref<64x32xf32, #tpu.memory_space<vmem>>, vector<1x32xf32>,
    %c5_116 = arith.constant 5 : index
    %c3_117 = arith.constant 3 : index
    %116 = memref.load %arg0[%c5_116, %c3_117] : memref<8x8xi32, #tpu.memory_space<smem>>
    %117 = arith.index_cast %116 : i32 to index
    %c0_118 = arith.constant 0 : index
    %118 = vector.load %arg1[%117, %c0_118] : memref<65x32xf32, #tpu.memory_space<vmem>>, vector<1x32xf32>
    %c29 = arith.constant 29 : index
    %c0_119 = arith.constant 0 : index
    %119 = vector.load %arg8[%c29, %c0_119] : memref<64x32xf32, #tpu.memory_space<vmem>>, vector<1x32xf32>
    tpu.vector_store %arg8[%c29, %c0_119], %118 {strides = array<i32>} : memref<64x32xf32, #tpu.memory_space<vmem>>, vector<1x32xf32>,
    %c6_120 = arith.constant 6 : index
    %c3_121 = arith.constant 3 : index
    %120 = memref.load %arg0[%c6_120, %c3_121] : memref<8x8xi32, #tpu.memory_space<smem>>
    %121 = arith.index_cast %120 : i32 to index
    %c0_122 = arith.constant 0 : index
    %122 = vector.load %arg1[%121, %c0_122] : memref<65x32xf32, #tpu.memory_space<vmem>>, vector<1x32xf32>
    %c30 = arith.constant 30 : index
    %c0_123 = arith.constant 0 : index
    %123 = vector.load %arg8[%c30, %c0_123] : memref<64x32xf32, #tpu.memory_space<vmem>>, vector<1x32xf32>
    tpu.vector_store %arg8[%c30, %c0_123], %122 {strides = array<i32>} : memref<64x32xf32, #tpu.memory_space<vmem>>, vector<1x32xf32>,
    %c7_124 = arith.constant 7 : index
    %c3_125 = arith.constant 3 : index
    %124 = memref.load %arg0[%c7_124, %c3_125] : memref<8x8xi32, #tpu.memory_space<smem>>
    %125 = arith.index_cast %124 : i32 to index
    %c0_126 = arith.constant 0 : index
    %126 = vector.load %arg1[%125, %c0_126] : memref<65x32xf32, #tpu.memory_space<vmem>>, vector<1x32xf32>
    %c31 = arith.constant 31 : index
    %c0_127 = arith.constant 0 : index
    %127 = vector.load %arg8[%c31, %c0_127] : memref<64x32xf32, #tpu.memory_space<vmem>>, vector<1x32xf32>
    tpu.vector_store %arg8[%c31, %c0_127], %126 {strides = array<i32>} : memref<64x32xf32, #tpu.memory_space<vmem>>, vector<1x32xf32>,
    %c0_128 = arith.constant 0 : index
    %c4_129 = arith.constant 4 : index
    %128 = memref.load %arg0[%c0_128, %c4_129] : memref<8x8xi32, #tpu.memory_space<smem>>
    %129 = arith.index_cast %128 : i32 to index
    %c0_130 = arith.constant 0 : index
    %130 = vector.load %arg1[%129, %c0_130] : memref<65x32xf32, #tpu.memory_space<vmem>>, vector<1x32xf32>
    %c32 = arith.constant 32 : index
    %c0_131 = arith.constant 0 : index
    %131 = vector.load %arg8[%c32, %c0_131] : memref<64x32xf32, #tpu.memory_space<vmem>>, vector<1x32xf32>
    tpu.vector_store %arg8[%c32, %c0_131], %130 {strides = array<i32>} : memref<64x32xf32, #tpu.memory_space<vmem>>, vector<1x32xf32>,
    %c1_132 = arith.constant 1 : index
    %c4_133 = arith.constant 4 : index
    %132 = memref.load %arg0[%c1_132, %c4_133] : memref<8x8xi32, #tpu.memory_space<smem>>
    %133 = arith.index_cast %132 : i32 to index
    %c0_134 = arith.constant 0 : index
    %134 = vector.load %arg1[%133, %c0_134] : memref<65x32xf32, #tpu.memory_space<vmem>>, vector<1x32xf32>
    %c33 = arith.constant 33 : index
    %c0_135 = arith.constant 0 : index
    %135 = vector.load %arg8[%c33, %c0_135] : memref<64x32xf32, #tpu.memory_space<vmem>>, vector<1x32xf32>
    tpu.vector_store %arg8[%c33, %c0_135], %134 {strides = array<i32>} : memref<64x32xf32, #tpu.memory_space<vmem>>, vector<1x32xf32>,
    %c2_136 = arith.constant 2 : index
    %c4_137 = arith.constant 4 : index
    %136 = memref.load %arg0[%c2_136, %c4_137] : memref<8x8xi32, #tpu.memory_space<smem>>
    %137 = arith.index_cast %136 : i32 to index
    %c0_138 = arith.constant 0 : index
    %138 = vector.load %arg1[%137, %c0_138] : memref<65x32xf32, #tpu.memory_space<vmem>>, vector<1x32xf32>
    %c34 = arith.constant 34 : index
    %c0_139 = arith.constant 0 : index
    %139 = vector.load %arg8[%c34, %c0_139] : memref<64x32xf32, #tpu.memory_space<vmem>>, vector<1x32xf32>
    tpu.vector_store %arg8[%c34, %c0_139], %138 {strides = array<i32>} : memref<64x32xf32, #tpu.memory_space<vmem>>, vector<1x32xf32>,
    %c3_140 = arith.constant 3 : index
    %c4_141 = arith.constant 4 : index
    %140 = memref.load %arg0[%c3_140, %c4_141] : memref<8x8xi32, #tpu.memory_space<smem>>
    %141 = arith.index_cast %140 : i32 to index
    %c0_142 = arith.constant 0 : index
    %142 = vector.load %arg1[%141, %c0_142] : memref<65x32xf32, #tpu.memory_space<vmem>>, vector<1x32xf32>
    %c35 = arith.constant 35 : index
    %c0_143 = arith.constant 0 : index
    %143 = vector.load %arg8[%c35, %c0_143] : memref<64x32xf32, #tpu.memory_space<vmem>>, vector<1x32xf32>
    tpu.vector_store %arg8[%c35, %c0_143], %142 {strides = array<i32>} : memref<64x32xf32, #tpu.memory_space<vmem>>, vector<1x32xf32>,
    %c4_144 = arith.constant 4 : index
    %c4_145 = arith.constant 4 : index
    %144 = memref.load %arg0[%c4_144, %c4_145] : memref<8x8xi32, #tpu.memory_space<smem>>
    %145 = arith.index_cast %144 : i32 to index
    %c0_146 = arith.constant 0 : index
    %146 = vector.load %arg1[%145, %c0_146] : memref<65x32xf32, #tpu.memory_space<vmem>>, vector<1x32xf32>
    %c36 = arith.constant 36 : index
    %c0_147 = arith.constant 0 : index
    %147 = vector.load %arg8[%c36, %c0_147] : memref<64x32xf32, #tpu.memory_space<vmem>>, vector<1x32xf32>
    tpu.vector_store %arg8[%c36, %c0_147], %146 {strides = array<i32>} : memref<64x32xf32, #tpu.memory_space<vmem>>, vector<1x32xf32>,
    %c5_148 = arith.constant 5 : index
    %c4_149 = arith.constant 4 : index
    %148 = memref.load %arg0[%c5_148, %c4_149] : memref<8x8xi32, #tpu.memory_space<smem>>
    %149 = arith.index_cast %148 : i32 to index
    %c0_150 = arith.constant 0 : index
    %150 = vector.load %arg1[%149, %c0_150] : memref<65x32xf32, #tpu.memory_space<vmem>>, vector<1x32xf32>
    %c37 = arith.constant 37 : index
    %c0_151 = arith.constant 0 : index
    %151 = vector.load %arg8[%c37, %c0_151] : memref<64x32xf32, #tpu.memory_space<vmem>>, vector<1x32xf32>
    tpu.vector_store %arg8[%c37, %c0_151], %150 {strides = array<i32>} : memref<64x32xf32, #tpu.memory_space<vmem>>, vector<1x32xf32>,
    %c6_152 = arith.constant 6 : index
    %c4_153 = arith.constant 4 : index
    %152 = memref.load %arg0[%c6_152, %c4_153] : memref<8x8xi32, #tpu.memory_space<smem>>
    %153 = arith.index_cast %152 : i32 to index
    %c0_154 = arith.constant 0 : index
    %154 = vector.load %arg1[%153, %c0_154] : memref<65x32xf32, #tpu.memory_space<vmem>>, vector<1x32xf32>
    %c38 = arith.constant 38 : index
    %c0_155 = arith.constant 0 : index
    %155 = vector.load %arg8[%c38, %c0_155] : memref<64x32xf32, #tpu.memory_space<vmem>>, vector<1x32xf32>
    tpu.vector_store %arg8[%c38, %c0_155], %154 {strides = array<i32>} : memref<64x32xf32, #tpu.memory_space<vmem>>, vector<1x32xf32>,
    %c7_156 = arith.constant 7 : index
    %c4_157 = arith.constant 4 : index
    %156 = memref.load %arg0[%c7_156, %c4_157] : memref<8x8xi32, #tpu.memory_space<smem>>
    %157 = arith.index_cast %156 : i32 to index
    %c0_158 = arith.constant 0 : index
    %158 = vector.load %arg1[%157, %c0_158] : memref<65x32xf32, #tpu.memory_space<vmem>>, vector<1x32xf32>
    %c39 = arith.constant 39 : index
    %c0_159 = arith.constant 0 : index
    %159 = vector.load %arg8[%c39, %c0_159] : memref<64x32xf32, #tpu.memory_space<vmem>>, vector<1x32xf32>
    tpu.vector_store %arg8[%c39, %c0_159], %158 {strides = array<i32>} : memref<64x32xf32, #tpu.memory_space<vmem>>, vector<1x32xf32>,
    %c0_160 = arith.constant 0 : index
    %c5_161 = arith.constant 5 : index
    %160 = memref.load %arg0[%c0_160, %c5_161] : memref<8x8xi32, #tpu.memory_space<smem>>
    %161 = arith.index_cast %160 : i32 to index
    %c0_162 = arith.constant 0 : index
    %162 = vector.load %arg1[%161, %c0_162] : memref<65x32xf32, #tpu.memory_space<vmem>>, vector<1x32xf32>
    %c40 = arith.constant 40 : index
    %c0_163 = arith.constant 0 : index
    %163 = vector.load %arg8[%c40, %c0_163] : memref<64x32xf32, #tpu.memory_space<vmem>>, vector<1x32xf32>
    tpu.vector_store %arg8[%c40, %c0_163], %162 {strides = array<i32>} : memref<64x32xf32, #tpu.memory_space<vmem>>, vector<1x32xf32>,
    %c1_164 = arith.constant 1 : index
    %c5_165 = arith.constant 5 : index
    %164 = memref.load %arg0[%c1_164, %c5_165] : memref<8x8xi32, #tpu.memory_space<smem>>
    %165 = arith.index_cast %164 : i32 to index
    %c0_166 = arith.constant 0 : index
    %166 = vector.load %arg1[%165, %c0_166] : memref<65x32xf32, #tpu.memory_space<vmem>>, vector<1x32xf32>
    %c41 = arith.constant 41 : index
    %c0_167 = arith.constant 0 : index
    %167 = vector.load %arg8[%c41, %c0_167] : memref<64x32xf32, #tpu.memory_space<vmem>>, vector<1x32xf32>
    tpu.vector_store %arg8[%c41, %c0_167], %166 {strides = array<i32>} : memref<64x32xf32, #tpu.memory_space<vmem>>, vector<1x32xf32>,
    %c2_168 = arith.constant 2 : index
    %c5_169 = arith.constant 5 : index
    %168 = memref.load %arg0[%c2_168, %c5_169] : memref<8x8xi32, #tpu.memory_space<smem>>
    %169 = arith.index_cast %168 : i32 to index
    %c0_170 = arith.constant 0 : index
    %170 = vector.load %arg1[%169, %c0_170] : memref<65x32xf32, #tpu.memory_space<vmem>>, vector<1x32xf32>
    %c42 = arith.constant 42 : index
    %c0_171 = arith.constant 0 : index
    %171 = vector.load %arg8[%c42, %c0_171] : memref<64x32xf32, #tpu.memory_space<vmem>>, vector<1x32xf32>
    tpu.vector_store %arg8[%c42, %c0_171], %170 {strides = array<i32>} : memref<64x32xf32, #tpu.memory_space<vmem>>, vector<1x32xf32>,
    %c3_172 = arith.constant 3 : index
    %c5_173 = arith.constant 5 : index
    %172 = memref.load %arg0[%c3_172, %c5_173] : memref<8x8xi32, #tpu.memory_space<smem>>
    %173 = arith.index_cast %172 : i32 to index
    %c0_174 = arith.constant 0 : index
    %174 = vector.load %arg1[%173, %c0_174] : memref<65x32xf32, #tpu.memory_space<vmem>>, vector<1x32xf32>
    %c43 = arith.constant 43 : index
    %c0_175 = arith.constant 0 : index
    %175 = vector.load %arg8[%c43, %c0_175] : memref<64x32xf32, #tpu.memory_space<vmem>>, vector<1x32xf32>
    tpu.vector_store %arg8[%c43, %c0_175], %174 {strides = array<i32>} : memref<64x32xf32, #tpu.memory_space<vmem>>, vector<1x32xf32>,
    %c4_176 = arith.constant 4 : index
    %c5_177 = arith.constant 5 : index
    %176 = memref.load %arg0[%c4_176, %c5_177] : memref<8x8xi32, #tpu.memory_space<smem>>
    %177 = arith.index_cast %176 : i32 to index
    %c0_178 = arith.constant 0 : index
    %178 = vector.load %arg1[%177, %c0_178] : memref<65x32xf32, #tpu.memory_space<vmem>>, vector<1x32xf32>
    %c44 = arith.constant 44 : index
    %c0_179 = arith.constant 0 : index
    %179 = vector.load %arg8[%c44, %c0_179] : memref<64x32xf32, #tpu.memory_space<vmem>>, vector<1x32xf32>
    tpu.vector_store %arg8[%c44, %c0_179], %178 {strides = array<i32>} : memref<64x32xf32, #tpu.memory_space<vmem>>, vector<1x32xf32>,
    %c5_180 = arith.constant 5 : index
    %c5_181 = arith.constant 5 : index
    %180 = memref.load %arg0[%c5_180, %c5_181] : memref<8x8xi32, #tpu.memory_space<smem>>
    %181 = arith.index_cast %180 : i32 to index
    %c0_182 = arith.constant 0 : index
    %182 = vector.load %arg1[%181, %c0_182] : memref<65x32xf32, #tpu.memory_space<vmem>>, vector<1x32xf32>
    %c45 = arith.constant 45 : index
    %c0_183 = arith.constant 0 : index
    %183 = vector.load %arg8[%c45, %c0_183] : memref<64x32xf32, #tpu.memory_space<vmem>>, vector<1x32xf32>
    tpu.vector_store %arg8[%c45, %c0_183], %182 {strides = array<i32>} : memref<64x32xf32, #tpu.memory_space<vmem>>, vector<1x32xf32>,
    %c6_184 = arith.constant 6 : index
    %c5_185 = arith.constant 5 : index
    %184 = memref.load %arg0[%c6_184, %c5_185] : memref<8x8xi32, #tpu.memory_space<smem>>
    %185 = arith.index_cast %184 : i32 to index
    %c0_186 = arith.constant 0 : index
    %186 = vector.load %arg1[%185, %c0_186] : memref<65x32xf32, #tpu.memory_space<vmem>>, vector<1x32xf32>
    %c46 = arith.constant 46 : index
    %c0_187 = arith.constant 0 : index
    %187 = vector.load %arg8[%c46, %c0_187] : memref<64x32xf32, #tpu.memory_space<vmem>>, vector<1x32xf32>
    tpu.vector_store %arg8[%c46, %c0_187], %186 {strides = array<i32>} : memref<64x32xf32, #tpu.memory_space<vmem>>, vector<1x32xf32>,
    %c7_188 = arith.constant 7 : index
    %c5_189 = arith.constant 5 : index
    %188 = memref.load %arg0[%c7_188, %c5_189] : memref<8x8xi32, #tpu.memory_space<smem>>
    %189 = arith.index_cast %188 : i32 to index
    %c0_190 = arith.constant 0 : index
    %190 = vector.load %arg1[%189, %c0_190] : memref<65x32xf32, #tpu.memory_space<vmem>>, vector<1x32xf32>
    %c47 = arith.constant 47 : index
    %c0_191 = arith.constant 0 : index
    %191 = vector.load %arg8[%c47, %c0_191] : memref<64x32xf32, #tpu.memory_space<vmem>>, vector<1x32xf32>
    tpu.vector_store %arg8[%c47, %c0_191], %190 {strides = array<i32>} : memref<64x32xf32, #tpu.memory_space<vmem>>, vector<1x32xf32>,
    %c0_192 = arith.constant 0 : index
    %c6_193 = arith.constant 6 : index
    %192 = memref.load %arg0[%c0_192, %c6_193] : memref<8x8xi32, #tpu.memory_space<smem>>
    %193 = arith.index_cast %192 : i32 to index
    %c0_194 = arith.constant 0 : index
    %194 = vector.load %arg1[%193, %c0_194] : memref<65x32xf32, #tpu.memory_space<vmem>>, vector<1x32xf32>
    %c48 = arith.constant 48 : index
    %c0_195 = arith.constant 0 : index
    %195 = vector.load %arg8[%c48, %c0_195] : memref<64x32xf32, #tpu.memory_space<vmem>>, vector<1x32xf32>
    tpu.vector_store %arg8[%c48, %c0_195], %194 {strides = array<i32>} : memref<64x32xf32, #tpu.memory_space<vmem>>, vector<1x32xf32>,
    %c1_196 = arith.constant 1 : index
    %c6_197 = arith.constant 6 : index
    %196 = memref.load %arg0[%c1_196, %c6_197] : memref<8x8xi32, #tpu.memory_space<smem>>
    %197 = arith.index_cast %196 : i32 to index
    %c0_198 = arith.constant 0 : index
    %198 = vector.load %arg1[%197, %c0_198] : memref<65x32xf32, #tpu.memory_space<vmem>>, vector<1x32xf32>
    %c49 = arith.constant 49 : index
    %c0_199 = arith.constant 0 : index
    %199 = vector.load %arg8[%c49, %c0_199] : memref<64x32xf32, #tpu.memory_space<vmem>>, vector<1x32xf32>
    tpu.vector_store %arg8[%c49, %c0_199], %198 {strides = array<i32>} : memref<64x32xf32, #tpu.memory_space<vmem>>, vector<1x32xf32>,
    %c2_200 = arith.constant 2 : index
    %c6_201 = arith.constant 6 : index
    %200 = memref.load %arg0[%c2_200, %c6_201] : memref<8x8xi32, #tpu.memory_space<smem>>
    %201 = arith.index_cast %200 : i32 to index
    %c0_202 = arith.constant 0 : index
    %202 = vector.load %arg1[%201, %c0_202] : memref<65x32xf32, #tpu.memory_space<vmem>>, vector<1x32xf32>
    %c50 = arith.constant 50 : index
    %c0_203 = arith.constant 0 : index
    %203 = vector.load %arg8[%c50, %c0_203] : memref<64x32xf32, #tpu.memory_space<vmem>>, vector<1x32xf32>
    tpu.vector_store %arg8[%c50, %c0_203], %202 {strides = array<i32>} : memref<64x32xf32, #tpu.memory_space<vmem>>, vector<1x32xf32>,
    %c3_204 = arith.constant 3 : index
    %c6_205 = arith.constant 6 : index
    %204 = memref.load %arg0[%c3_204, %c6_205] : memref<8x8xi32, #tpu.memory_space<smem>>
    %205 = arith.index_cast %204 : i32 to index
    %c0_206 = arith.constant 0 : index
    %206 = vector.load %arg1[%205, %c0_206] : memref<65x32xf32, #tpu.memory_space<vmem>>, vector<1x32xf32>
    %c51 = arith.constant 51 : index
    %c0_207 = arith.constant 0 : index
    %207 = vector.load %arg8[%c51, %c0_207] : memref<64x32xf32, #tpu.memory_space<vmem>>, vector<1x32xf32>
    tpu.vector_store %arg8[%c51, %c0_207], %206 {strides = array<i32>} : memref<64x32xf32, #tpu.memory_space<vmem>>, vector<1x32xf32>,
    %c4_208 = arith.constant 4 : index
    %c6_209 = arith.constant 6 : index
    %208 = memref.load %arg0[%c4_208, %c6_209] : memref<8x8xi32, #tpu.memory_space<smem>>
    %209 = arith.index_cast %208 : i32 to index
    %c0_210 = arith.constant 0 : index
    %210 = vector.load %arg1[%209, %c0_210] : memref<65x32xf32, #tpu.memory_space<vmem>>, vector<1x32xf32>
    %c52 = arith.constant 52 : index
    %c0_211 = arith.constant 0 : index
    %211 = vector.load %arg8[%c52, %c0_211] : memref<64x32xf32, #tpu.memory_space<vmem>>, vector<1x32xf32>
    tpu.vector_store %arg8[%c52, %c0_211], %210 {strides = array<i32>} : memref<64x32xf32, #tpu.memory_space<vmem>>, vector<1x32xf32>,
    %c5_212 = arith.constant 5 : index
    %c6_213 = arith.constant 6 : index
    %212 = memref.load %arg0[%c5_212, %c6_213] : memref<8x8xi32, #tpu.memory_space<smem>>
    %213 = arith.index_cast %212 : i32 to index
    %c0_214 = arith.constant 0 : index
    %214 = vector.load %arg1[%213, %c0_214] : memref<65x32xf32, #tpu.memory_space<vmem>>, vector<1x32xf32>
    %c53 = arith.constant 53 : index
    %c0_215 = arith.constant 0 : index
    %215 = vector.load %arg8[%c53, %c0_215] : memref<64x32xf32, #tpu.memory_space<vmem>>, vector<1x32xf32>
    tpu.vector_store %arg8[%c53, %c0_215], %214 {strides = array<i32>} : memref<64x32xf32, #tpu.memory_space<vmem>>, vector<1x32xf32>,
    %c6_216 = arith.constant 6 : index
    %c6_217 = arith.constant 6 : index
    %216 = memref.load %arg0[%c6_216, %c6_217] : memref<8x8xi32, #tpu.memory_space<smem>>
    %217 = arith.index_cast %216 : i32 to index
    %c0_218 = arith.constant 0 : index
    %218 = vector.load %arg1[%217, %c0_218] : memref<65x32xf32, #tpu.memory_space<vmem>>, vector<1x32xf32>
    %c54 = arith.constant 54 : index
    %c0_219 = arith.constant 0 : index
    %219 = vector.load %arg8[%c54, %c0_219] : memref<64x32xf32, #tpu.memory_space<vmem>>, vector<1x32xf32>
    tpu.vector_store %arg8[%c54, %c0_219], %218 {strides = array<i32>} : memref<64x32xf32, #tpu.memory_space<vmem>>, vector<1x32xf32>,
    %c7_220 = arith.constant 7 : index
    %c6_221 = arith.constant 6 : index
    %220 = memref.load %arg0[%c7_220, %c6_221] : memref<8x8xi32, #tpu.memory_space<smem>>
    %221 = arith.index_cast %220 : i32 to index
    %c0_222 = arith.constant 0 : index
    %222 = vector.load %arg1[%221, %c0_222] : memref<65x32xf32, #tpu.memory_space<vmem>>, vector<1x32xf32>
    %c55 = arith.constant 55 : index
    %c0_223 = arith.constant 0 : index
    %223 = vector.load %arg8[%c55, %c0_223] : memref<64x32xf32, #tpu.memory_space<vmem>>, vector<1x32xf32>
    tpu.vector_store %arg8[%c55, %c0_223], %222 {strides = array<i32>} : memref<64x32xf32, #tpu.memory_space<vmem>>, vector<1x32xf32>,
    %c0_224 = arith.constant 0 : index
    %c7_225 = arith.constant 7 : index
    %224 = memref.load %arg0[%c0_224, %c7_225] : memref<8x8xi32, #tpu.memory_space<smem>>
    %225 = arith.index_cast %224 : i32 to index
    %c0_226 = arith.constant 0 : index
    %226 = vector.load %arg1[%225, %c0_226] : memref<65x32xf32, #tpu.memory_space<vmem>>, vector<1x32xf32>
    %c56 = arith.constant 56 : index
    %c0_227 = arith.constant 0 : index
    %227 = vector.load %arg8[%c56, %c0_227] : memref<64x32xf32, #tpu.memory_space<vmem>>, vector<1x32xf32>
    tpu.vector_store %arg8[%c56, %c0_227], %226 {strides = array<i32>} : memref<64x32xf32, #tpu.memory_space<vmem>>, vector<1x32xf32>,
    %c1_228 = arith.constant 1 : index
    %c7_229 = arith.constant 7 : index
    %228 = memref.load %arg0[%c1_228, %c7_229] : memref<8x8xi32, #tpu.memory_space<smem>>
    %229 = arith.index_cast %228 : i32 to index
    %c0_230 = arith.constant 0 : index
    %230 = vector.load %arg1[%229, %c0_230] : memref<65x32xf32, #tpu.memory_space<vmem>>, vector<1x32xf32>
    %c57 = arith.constant 57 : index
    %c0_231 = arith.constant 0 : index
    %231 = vector.load %arg8[%c57, %c0_231] : memref<64x32xf32, #tpu.memory_space<vmem>>, vector<1x32xf32>
    tpu.vector_store %arg8[%c57, %c0_231], %230 {strides = array<i32>} : memref<64x32xf32, #tpu.memory_space<vmem>>, vector<1x32xf32>,
    %c2_232 = arith.constant 2 : index
    %c7_233 = arith.constant 7 : index
    %232 = memref.load %arg0[%c2_232, %c7_233] : memref<8x8xi32, #tpu.memory_space<smem>>
    %233 = arith.index_cast %232 : i32 to index
    %c0_234 = arith.constant 0 : index
    %234 = vector.load %arg1[%233, %c0_234] : memref<65x32xf32, #tpu.memory_space<vmem>>, vector<1x32xf32>
    %c58 = arith.constant 58 : index
    %c0_235 = arith.constant 0 : index
    %235 = vector.load %arg8[%c58, %c0_235] : memref<64x32xf32, #tpu.memory_space<vmem>>, vector<1x32xf32>
    tpu.vector_store %arg8[%c58, %c0_235], %234 {strides = array<i32>} : memref<64x32xf32, #tpu.memory_space<vmem>>, vector<1x32xf32>,
    %c3_236 = arith.constant 3 : index
    %c7_237 = arith.constant 7 : index
    %236 = memref.load %arg0[%c3_236, %c7_237] : memref<8x8xi32, #tpu.memory_space<smem>>
    %237 = arith.index_cast %236 : i32 to index
    %c0_238 = arith.constant 0 : index
    %238 = vector.load %arg1[%237, %c0_238] : memref<65x32xf32, #tpu.memory_space<vmem>>, vector<1x32xf32>
    %c59 = arith.constant 59 : index
    %c0_239 = arith.constant 0 : index
    %239 = vector.load %arg8[%c59, %c0_239] : memref<64x32xf32, #tpu.memory_space<vmem>>, vector<1x32xf32>
    tpu.vector_store %arg8[%c59, %c0_239], %238 {strides = array<i32>} : memref<64x32xf32, #tpu.memory_space<vmem>>, vector<1x32xf32>,
    %c4_240 = arith.constant 4 : index
    %c7_241 = arith.constant 7 : index
    %240 = memref.load %arg0[%c4_240, %c7_241] : memref<8x8xi32, #tpu.memory_space<smem>>
    %241 = arith.index_cast %240 : i32 to index
    %c0_242 = arith.constant 0 : index
    %242 = vector.load %arg1[%241, %c0_242] : memref<65x32xf32, #tpu.memory_space<vmem>>, vector<1x32xf32>
    %c60 = arith.constant 60 : index
    %c0_243 = arith.constant 0 : index
    %243 = vector.load %arg8[%c60, %c0_243] : memref<64x32xf32, #tpu.memory_space<vmem>>, vector<1x32xf32>
    tpu.vector_store %arg8[%c60, %c0_243], %242 {strides = array<i32>} : memref<64x32xf32, #tpu.memory_space<vmem>>, vector<1x32xf32>,
    %c5_244 = arith.constant 5 : index
    %c7_245 = arith.constant 7 : index
    %244 = memref.load %arg0[%c5_244, %c7_245] : memref<8x8xi32, #tpu.memory_space<smem>>
    %245 = arith.index_cast %244 : i32 to index
    %c0_246 = arith.constant 0 : index
    %246 = vector.load %arg1[%245, %c0_246] : memref<65x32xf32, #tpu.memory_space<vmem>>, vector<1x32xf32>
    %c61 = arith.constant 61 : index
    %c0_247 = arith.constant 0 : index
    %247 = vector.load %arg8[%c61, %c0_247] : memref<64x32xf32, #tpu.memory_space<vmem>>, vector<1x32xf32>
    tpu.vector_store %arg8[%c61, %c0_247], %246 {strides = array<i32>} : memref<64x32xf32, #tpu.memory_space<vmem>>, vector<1x32xf32>,
    %c6_248 = arith.constant 6 : index
    %c7_249 = arith.constant 7 : index
    %248 = memref.load %arg0[%c6_248, %c7_249] : memref<8x8xi32, #tpu.memory_space<smem>>
    %249 = arith.index_cast %248 : i32 to index
    %c0_250 = arith.constant 0 : index
    %250 = vector.load %arg1[%249, %c0_250] : memref<65x32xf32, #tpu.memory_space<vmem>>, vector<1x32xf32>
    %c62 = arith.constant 62 : index
    %c0_251 = arith.constant 0 : index
    %251 = vector.load %arg8[%c62, %c0_251] : memref<64x32xf32, #tpu.memory_space<vmem>>, vector<1x32xf32>
    tpu.vector_store %arg8[%c62, %c0_251], %250 {strides = array<i32>} : memref<64x32xf32, #tpu.memory_space<vmem>>, vector<1x32xf32>,
    %c7_252 = arith.constant 7 : index
    %c7_253 = arith.constant 7 : index
    %252 = memref.load %arg0[%c7_252, %c7_253] : memref<8x8xi32, #tpu.memory_space<smem>>
    %253 = arith.index_cast %252 : i32 to index
    %c0_254 = arith.constant 0 : index
    %254 = vector.load %arg1[%253, %c0_254] : memref<65x32xf32, #tpu.memory_space<vmem>>, vector<1x32xf32>
    %c63 = arith.constant 63 : index
    %c0_255 = arith.constant 0 : index
    %255 = vector.load %arg8[%c63, %c0_255] : memref<64x32xf32, #tpu.memory_space<vmem>>, vector<1x32xf32>
    tpu.vector_store %arg8[%c63, %c0_255], %254 {strides = array<i32>} : memref<64x32xf32, #tpu.memory_space<vmem>>, vector<1x32xf32>,
    %c0_256 = arith.constant 0 : index
    %c0_257 = arith.constant 0 : index
    %256 = vector.load %arg8[%c0_256, %c0_257] : memref<64x32xf32, #tpu.memory_space<vmem>>, vector<64x32xf32>
    %c0_258 = arith.constant 0 : index
    %c0_259 = arith.constant 0 : index
    %257 = vector.load %arg2[%c0_258, %c0_259] : memref<32x128xf32, #tpu.memory_space<vmem>>, vector<32x128xf32>
    %cst = arith.constant dense<0.000000e+00> : vector<64x128xf32>
    %258 = tpu.matmul %256, %257, %cst {dimension_numbers = #tpu.dot_dimension_numbers<[1], [0], [0], [1], [0, 0, 1, 1], [], []>} : vector<64x32xf32>, vector<32x128xf32>, vector<64x128xf32> -> vector<64x128xf32>
    %c0_260 = arith.constant 0 : index
    %c0_261 = arith.constant 0 : index
    %259 = vector.load %arg4[%c0_260, %c0_261] : memref<1x128xf32, #tpu.memory_space<vmem>>, vector<1x128xf32>
    %260 = vector.broadcast %259 : vector<1x128xf32> to vector<64x128xf32>
    %261 = arith.addf %258, %260 : vector<64x128xf32>
    %c0_262 = arith.constant 0 : index
    %c0_263 = arith.constant 0 : index
    %262 = vector.load %arg9[%c0_262, %c0_263] : memref<64x128xf32, #tpu.memory_space<vmem>>, vector<64x128xf32>
    tpu.vector_store %arg9[%c0_262, %c0_263], %261 {strides = array<i32>} : memref<64x128xf32, #tpu.memory_space<vmem>>, vector<64x128xf32>,
    %c0_264 = arith.constant 0 : index
    %c0_265 = arith.constant 0 : index
    %263 = vector.load %arg3[%c0_264, %c0_265] : memref<32x128xf32, #tpu.memory_space<vmem>>, vector<32x128xf32>
    %cst_266 = arith.constant 0.000000e+00 : f32
    %264 = vector.broadcast %cst_266 : f32 to vector<8x32xf32>
    %cst_267 = arith.constant 0.000000e+00 : f32
    %265 = vector.broadcast %cst_267 : f32 to vector<8x32xf32>
    %c0_i32 = arith.constant 0 : i32
    %c8_i32 = arith.constant 8 : i32
    %266 = arith.muli %c0_i32, %c8_i32 : i32
    %267 = tpu.assume_multiple %266, 8 : i32
    %268 = arith.index_cast %267 : i32 to index
    %c0_268 = arith.constant 0 : index
    %269 = vector.load %arg9[%268, %c0_268] : memref<64x128xf32, #tpu.memory_space<vmem>>, vector<8x128xf32>
    %cst_269 = arith.constant dense<0.000000e+00> : vector<8x128xf32>
    %270 = tpu.matmul %264, %263, %cst_269 {dimension_numbers = #tpu.dot_dimension_numbers<[1], [0], [0], [1], [0, 0, 1, 1], [], []>} : vector<8x32xf32>, vector<32x128xf32>, vector<8x128xf32> -> vector<8x128xf32>
    %271 = arith.addf %269, %270 : vector<8x128xf32>
    %272 = arith.negf %271 : vector<8x128xf32>
    %273 = math.exp %272 : vector<8x128xf32>
    %cst_270 = arith.constant 1.000000e+00 : f32
    %274 = vector.broadcast %cst_270 : f32 to vector<8x128xf32>
    %275 = arith.addf %274, %273 : vector<8x128xf32>
    %276 = arith.divf %274, %275 : vector<8x128xf32>
    %277 = vector.extract_strided_slice %271 {offsets = [0, 64], sizes = [8, 32], strides = [1, 1]} : vector<8x128xf32> to vector<8x32xf32>
    %278 = math.tanh %277 : vector<8x32xf32>
    %279 = vector.extract_strided_slice %276 {offsets = [0, 0], sizes = [8, 32], strides = [1, 1]} : vector<8x128xf32> to vector<8x32xf32>
    %280 = vector.extract_strided_slice %276 {offsets = [0, 32], sizes = [8, 32], strides = [1, 1]} : vector<8x128xf32> to vector<8x32xf32>
    %281 = vector.extract_strided_slice %276 {offsets = [0, 96], sizes = [8, 32], strides = [1, 1]} : vector<8x128xf32> to vector<8x32xf32>
    %282 = arith.mulf %280, %265 : vector<8x32xf32>
    %283 = arith.mulf %279, %278 : vector<8x32xf32>
    %284 = arith.addf %282, %283 : vector<8x32xf32>
    %285 = math.tanh %284 : vector<8x32xf32>
    %286 = arith.mulf %281, %285 : vector<8x32xf32>
    %c1_i32 = arith.constant 1 : i32
    %c8_i32_271 = arith.constant 8 : i32
    %287 = arith.muli %c1_i32, %c8_i32_271 : i32
    %288 = tpu.assume_multiple %287, 8 : i32
    %289 = arith.index_cast %288 : i32 to index
    %c0_272 = arith.constant 0 : index
    %290 = vector.load %arg9[%289, %c0_272] : memref<64x128xf32, #tpu.memory_space<vmem>>, vector<8x128xf32>
    %cst_273 = arith.constant dense<0.000000e+00> : vector<8x128xf32>
    %291 = tpu.matmul %286, %263, %cst_273 {dimension_numbers = #tpu.dot_dimension_numbers<[1], [0], [0], [1], [0, 0, 1, 1], [], []>} : vector<8x32xf32>, vector<32x128xf32>, vector<8x128xf32> -> vector<8x128xf32>
    %292 = arith.addf %290, %291 : vector<8x128xf32>
    %293 = arith.negf %292 : vector<8x128xf32>
    %294 = math.exp %293 : vector<8x128xf32>
    %cst_274 = arith.constant 1.000000e+00 : f32
    %295 = vector.broadcast %cst_274 : f32 to vector<8x128xf32>
    %296 = arith.addf %295, %294 : vector<8x128xf32>
    %297 = arith.divf %295, %296 : vector<8x128xf32>
    %298 = vector.extract_strided_slice %292 {offsets = [0, 64], sizes = [8, 32], strides = [1, 1]} : vector<8x128xf32> to vector<8x32xf32>
    %299 = math.tanh %298 : vector<8x32xf32>
    %300 = vector.extract_strided_slice %297 {offsets = [0, 0], sizes = [8, 32], strides = [1, 1]} : vector<8x128xf32> to vector<8x32xf32>
    %301 = vector.extract_strided_slice %297 {offsets = [0, 32], sizes = [8, 32], strides = [1, 1]} : vector<8x128xf32> to vector<8x32xf32>
    %302 = vector.extract_strided_slice %297 {offsets = [0, 96], sizes = [8, 32], strides = [1, 1]} : vector<8x128xf32> to vector<8x32xf32>
    %303 = arith.mulf %301, %284 : vector<8x32xf32>
    %304 = arith.mulf %300, %299 : vector<8x32xf32>
    %305 = arith.addf %303, %304 : vector<8x32xf32>
    %306 = math.tanh %305 : vector<8x32xf32>
    %307 = arith.mulf %302, %306 : vector<8x32xf32>
    %c2_i32 = arith.constant 2 : i32
    %c8_i32_275 = arith.constant 8 : i32
    %308 = arith.muli %c2_i32, %c8_i32_275 : i32
    %309 = tpu.assume_multiple %308, 8 : i32
    %310 = arith.index_cast %309 : i32 to index
    %c0_276 = arith.constant 0 : index
    %311 = vector.load %arg9[%310, %c0_276] : memref<64x128xf32, #tpu.memory_space<vmem>>, vector<8x128xf32>
    %cst_277 = arith.constant dense<0.000000e+00> : vector<8x128xf32>
    %312 = tpu.matmul %307, %263, %cst_277 {dimension_numbers = #tpu.dot_dimension_numbers<[1], [0], [0], [1], [0, 0, 1, 1], [], []>} : vector<8x32xf32>, vector<32x128xf32>, vector<8x128xf32> -> vector<8x128xf32>
    %313 = arith.addf %311, %312 : vector<8x128xf32>
    %314 = arith.negf %313 : vector<8x128xf32>
    %315 = math.exp %314 : vector<8x128xf32>
    %cst_278 = arith.constant 1.000000e+00 : f32
    %316 = vector.broadcast %cst_278 : f32 to vector<8x128xf32>
    %317 = arith.addf %316, %315 : vector<8x128xf32>
    %318 = arith.divf %316, %317 : vector<8x128xf32>
    %319 = vector.extract_strided_slice %313 {offsets = [0, 64], sizes = [8, 32], strides = [1, 1]} : vector<8x128xf32> to vector<8x32xf32>
    %320 = math.tanh %319 : vector<8x32xf32>
    %321 = vector.extract_strided_slice %318 {offsets = [0, 0], sizes = [8, 32], strides = [1, 1]} : vector<8x128xf32> to vector<8x32xf32>
    %322 = vector.extract_strided_slice %318 {offsets = [0, 32], sizes = [8, 32], strides = [1, 1]} : vector<8x128xf32> to vector<8x32xf32>
    %323 = vector.extract_strided_slice %318 {offsets = [0, 96], sizes = [8, 32], strides = [1, 1]} : vector<8x128xf32> to vector<8x32xf32>
    %324 = arith.mulf %322, %305 : vector<8x32xf32>
    %325 = arith.mulf %321, %320 : vector<8x32xf32>
    %326 = arith.addf %324, %325 : vector<8x32xf32>
    %327 = math.tanh %326 : vector<8x32xf32>
    %328 = arith.mulf %323, %327 : vector<8x32xf32>
    %c3_i32 = arith.constant 3 : i32
    %c8_i32_279 = arith.constant 8 : i32
    %329 = arith.muli %c3_i32, %c8_i32_279 : i32
    %330 = tpu.assume_multiple %329, 8 : i32
    %331 = arith.index_cast %330 : i32 to index
    %c0_280 = arith.constant 0 : index
    %332 = vector.load %arg9[%331, %c0_280] : memref<64x128xf32, #tpu.memory_space<vmem>>, vector<8x128xf32>
    %cst_281 = arith.constant dense<0.000000e+00> : vector<8x128xf32>
    %333 = tpu.matmul %328, %263, %cst_281 {dimension_numbers = #tpu.dot_dimension_numbers<[1], [0], [0], [1], [0, 0, 1, 1], [], []>} : vector<8x32xf32>, vector<32x128xf32>, vector<8x128xf32> -> vector<8x128xf32>
    %334 = arith.addf %332, %333 : vector<8x128xf32>
    %335 = arith.negf %334 : vector<8x128xf32>
    %336 = math.exp %335 : vector<8x128xf32>
    %cst_282 = arith.constant 1.000000e+00 : f32
    %337 = vector.broadcast %cst_282 : f32 to vector<8x128xf32>
    %338 = arith.addf %337, %336 : vector<8x128xf32>
    %339 = arith.divf %337, %338 : vector<8x128xf32>
    %340 = vector.extract_strided_slice %334 {offsets = [0, 64], sizes = [8, 32], strides = [1, 1]} : vector<8x128xf32> to vector<8x32xf32>
    %341 = math.tanh %340 : vector<8x32xf32>
    %342 = vector.extract_strided_slice %339 {offsets = [0, 0], sizes = [8, 32], strides = [1, 1]} : vector<8x128xf32> to vector<8x32xf32>
    %343 = vector.extract_strided_slice %339 {offsets = [0, 32], sizes = [8, 32], strides = [1, 1]} : vector<8x128xf32> to vector<8x32xf32>
    %344 = vector.extract_strided_slice %339 {offsets = [0, 96], sizes = [8, 32], strides = [1, 1]} : vector<8x128xf32> to vector<8x32xf32>
    %345 = arith.mulf %343, %326 : vector<8x32xf32>
    %346 = arith.mulf %342, %341 : vector<8x32xf32>
    %347 = arith.addf %345, %346 : vector<8x32xf32>
    %348 = math.tanh %347 : vector<8x32xf32>
    %349 = arith.mulf %344, %348 : vector<8x32xf32>
    %c4_i32 = arith.constant 4 : i32
    %c8_i32_283 = arith.constant 8 : i32
    %350 = arith.muli %c4_i32, %c8_i32_283 : i32
    %351 = tpu.assume_multiple %350, 8 : i32
    %352 = arith.index_cast %351 : i32 to index
    %c0_284 = arith.constant 0 : index
    %353 = vector.load %arg9[%352, %c0_284] : memref<64x128xf32, #tpu.memory_space<vmem>>, vector<8x128xf32>
    %cst_285 = arith.constant dense<0.000000e+00> : vector<8x128xf32>
    %354 = tpu.matmul %349, %263, %cst_285 {dimension_numbers = #tpu.dot_dimension_numbers<[1], [0], [0], [1], [0, 0, 1, 1], [], []>} : vector<8x32xf32>, vector<32x128xf32>, vector<8x128xf32> -> vector<8x128xf32>
    %355 = arith.addf %353, %354 : vector<8x128xf32>
    %356 = arith.negf %355 : vector<8x128xf32>
    %357 = math.exp %356 : vector<8x128xf32>
    %cst_286 = arith.constant 1.000000e+00 : f32
    %358 = vector.broadcast %cst_286 : f32 to vector<8x128xf32>
    %359 = arith.addf %358, %357 : vector<8x128xf32>
    %360 = arith.divf %358, %359 : vector<8x128xf32>
    %361 = vector.extract_strided_slice %355 {offsets = [0, 64], sizes = [8, 32], strides = [1, 1]} : vector<8x128xf32> to vector<8x32xf32>
    %362 = math.tanh %361 : vector<8x32xf32>
    %363 = vector.extract_strided_slice %360 {offsets = [0, 0], sizes = [8, 32], strides = [1, 1]} : vector<8x128xf32> to vector<8x32xf32>
    %364 = vector.extract_strided_slice %360 {offsets = [0, 32], sizes = [8, 32], strides = [1, 1]} : vector<8x128xf32> to vector<8x32xf32>
    %365 = vector.extract_strided_slice %360 {offsets = [0, 96], sizes = [8, 32], strides = [1, 1]} : vector<8x128xf32> to vector<8x32xf32>
    %366 = arith.mulf %364, %347 : vector<8x32xf32>
    %367 = arith.mulf %363, %362 : vector<8x32xf32>
    %368 = arith.addf %366, %367 : vector<8x32xf32>
    %369 = math.tanh %368 : vector<8x32xf32>
    %370 = arith.mulf %365, %369 : vector<8x32xf32>
    %c5_i32 = arith.constant 5 : i32
    %c8_i32_287 = arith.constant 8 : i32
    %371 = arith.muli %c5_i32, %c8_i32_287 : i32
    %372 = tpu.assume_multiple %371, 8 : i32
    %373 = arith.index_cast %372 : i32 to index
    %c0_288 = arith.constant 0 : index
    %374 = vector.load %arg9[%373, %c0_288] : memref<64x128xf32, #tpu.memory_space<vmem>>, vector<8x128xf32>
    %cst_289 = arith.constant dense<0.000000e+00> : vector<8x128xf32>
    %375 = tpu.matmul %370, %263, %cst_289 {dimension_numbers = #tpu.dot_dimension_numbers<[1], [0], [0], [1], [0, 0, 1, 1], [], []>} : vector<8x32xf32>, vector<32x128xf32>, vector<8x128xf32> -> vector<8x128xf32>
    %376 = arith.addf %374, %375 : vector<8x128xf32>
    %377 = arith.negf %376 : vector<8x128xf32>
    %378 = math.exp %377 : vector<8x128xf32>
    %cst_290 = arith.constant 1.000000e+00 : f32
    %379 = vector.broadcast %cst_290 : f32 to vector<8x128xf32>
    %380 = arith.addf %379, %378 : vector<8x128xf32>
    %381 = arith.divf %379, %380 : vector<8x128xf32>
    %382 = vector.extract_strided_slice %376 {offsets = [0, 64], sizes = [8, 32], strides = [1, 1]} : vector<8x128xf32> to vector<8x32xf32>
    %383 = math.tanh %382 : vector<8x32xf32>
    %384 = vector.extract_strided_slice %381 {offsets = [0, 0], sizes = [8, 32], strides = [1, 1]} : vector<8x128xf32> to vector<8x32xf32>
    %385 = vector.extract_strided_slice %381 {offsets = [0, 32], sizes = [8, 32], strides = [1, 1]} : vector<8x128xf32> to vector<8x32xf32>
    %386 = vector.extract_strided_slice %381 {offsets = [0, 96], sizes = [8, 32], strides = [1, 1]} : vector<8x128xf32> to vector<8x32xf32>
    %387 = arith.mulf %385, %368 : vector<8x32xf32>
    %388 = arith.mulf %384, %383 : vector<8x32xf32>
    %389 = arith.addf %387, %388 : vector<8x32xf32>
    %390 = math.tanh %389 : vector<8x32xf32>
    %391 = arith.mulf %386, %390 : vector<8x32xf32>
    %c6_i32 = arith.constant 6 : i32
    %c8_i32_291 = arith.constant 8 : i32
    %392 = arith.muli %c6_i32, %c8_i32_291 : i32
    %393 = tpu.assume_multiple %392, 8 : i32
    %394 = arith.index_cast %393 : i32 to index
    %c0_292 = arith.constant 0 : index
    %395 = vector.load %arg9[%394, %c0_292] : memref<64x128xf32, #tpu.memory_space<vmem>>, vector<8x128xf32>
    %cst_293 = arith.constant dense<0.000000e+00> : vector<8x128xf32>
    %396 = tpu.matmul %391, %263, %cst_293 {dimension_numbers = #tpu.dot_dimension_numbers<[1], [0], [0], [1], [0, 0, 1, 1], [], []>} : vector<8x32xf32>, vector<32x128xf32>, vector<8x128xf32> -> vector<8x128xf32>
    %397 = arith.addf %395, %396 : vector<8x128xf32>
    %398 = arith.negf %397 : vector<8x128xf32>
    %399 = math.exp %398 : vector<8x128xf32>
    %cst_294 = arith.constant 1.000000e+00 : f32
    %400 = vector.broadcast %cst_294 : f32 to vector<8x128xf32>
    %401 = arith.addf %400, %399 : vector<8x128xf32>
    %402 = arith.divf %400, %401 : vector<8x128xf32>
    %403 = vector.extract_strided_slice %397 {offsets = [0, 64], sizes = [8, 32], strides = [1, 1]} : vector<8x128xf32> to vector<8x32xf32>
    %404 = math.tanh %403 : vector<8x32xf32>
    %405 = vector.extract_strided_slice %402 {offsets = [0, 0], sizes = [8, 32], strides = [1, 1]} : vector<8x128xf32> to vector<8x32xf32>
    %406 = vector.extract_strided_slice %402 {offsets = [0, 32], sizes = [8, 32], strides = [1, 1]} : vector<8x128xf32> to vector<8x32xf32>
    %407 = vector.extract_strided_slice %402 {offsets = [0, 96], sizes = [8, 32], strides = [1, 1]} : vector<8x128xf32> to vector<8x32xf32>
    %408 = arith.mulf %406, %389 : vector<8x32xf32>
    %409 = arith.mulf %405, %404 : vector<8x32xf32>
    %410 = arith.addf %408, %409 : vector<8x32xf32>
    %411 = math.tanh %410 : vector<8x32xf32>
    %412 = arith.mulf %407, %411 : vector<8x32xf32>
    %c7_i32 = arith.constant 7 : i32
    %c8_i32_295 = arith.constant 8 : i32
    %413 = arith.muli %c7_i32, %c8_i32_295 : i32
    %414 = tpu.assume_multiple %413, 8 : i32
    %415 = arith.index_cast %414 : i32 to index
    %c0_296 = arith.constant 0 : index
    %416 = vector.load %arg9[%415, %c0_296] : memref<64x128xf32, #tpu.memory_space<vmem>>, vector<8x128xf32>
    %cst_297 = arith.constant dense<0.000000e+00> : vector<8x128xf32>
    %417 = tpu.matmul %412, %263, %cst_297 {dimension_numbers = #tpu.dot_dimension_numbers<[1], [0], [0], [1], [0, 0, 1, 1], [], []>} : vector<8x32xf32>, vector<32x128xf32>, vector<8x128xf32> -> vector<8x128xf32>
    %418 = arith.addf %416, %417 : vector<8x128xf32>
    %419 = arith.negf %418 : vector<8x128xf32>
    %420 = math.exp %419 : vector<8x128xf32>
    %cst_298 = arith.constant 1.000000e+00 : f32
    %421 = vector.broadcast %cst_298 : f32 to vector<8x128xf32>
    %422 = arith.addf %421, %420 : vector<8x128xf32>
    %423 = arith.divf %421, %422 : vector<8x128xf32>
    %424 = vector.extract_strided_slice %418 {offsets = [0, 64], sizes = [8, 32], strides = [1, 1]} : vector<8x128xf32> to vector<8x32xf32>
    %425 = math.tanh %424 : vector<8x32xf32>
    %426 = vector.extract_strided_slice %423 {offsets = [0, 0], sizes = [8, 32], strides = [1, 1]} : vector<8x128xf32> to vector<8x32xf32>
    %427 = vector.extract_strided_slice %423 {offsets = [0, 32], sizes = [8, 32], strides = [1, 1]} : vector<8x128xf32> to vector<8x32xf32>
    %428 = vector.extract_strided_slice %423 {offsets = [0, 96], sizes = [8, 32], strides = [1, 1]} : vector<8x128xf32> to vector<8x32xf32>
    %429 = arith.mulf %427, %410 : vector<8x32xf32>
    %430 = arith.mulf %426, %425 : vector<8x32xf32>
    %431 = arith.addf %429, %430 : vector<8x32xf32>
    %432 = math.tanh %431 : vector<8x32xf32>
    %433 = arith.mulf %428, %432 : vector<8x32xf32>
    %c8_i32_299 = arith.constant 8 : i32
    %c0_300 = arith.constant 0 : index
    %c0_301 = arith.constant 0 : index
    %434 = vector.load %arg5[%c0_300, %c0_301] : memref<32x128xf32, #tpu.memory_space<vmem>>, vector<32x128xf32>
    %cst_302 = arith.constant dense<0.000000e+00> : vector<8x128xf32>
    %435 = tpu.matmul %433, %434, %cst_302 {dimension_numbers = #tpu.dot_dimension_numbers<[1], [0], [0], [1], [0, 0, 1, 1], [], []>} : vector<8x32xf32>, vector<32x128xf32>, vector<8x128xf32> -> vector<8x128xf32>
    %c0_303 = arith.constant 0 : index
    %c0_304 = arith.constant 0 : index
    %436 = vector.load %arg6[%c0_303, %c0_304] : memref<1x128xf32, #tpu.memory_space<vmem>>, vector<1x128xf32>
    %437 = vector.broadcast %436 : vector<1x128xf32> to vector<8x128xf32>
    %438 = arith.addf %435, %437 : vector<8x128xf32>
    %439 = arith.negf %438 : vector<8x128xf32>
    %440 = math.exp %439 : vector<8x128xf32>
    %cst_305 = arith.constant 1.000000e+00 : f32
    %441 = vector.broadcast %cst_305 : f32 to vector<8x128xf32>
    %442 = arith.addf %441, %440 : vector<8x128xf32>
    %443 = arith.divf %441, %442 : vector<8x128xf32>
    %c0_306 = arith.constant 0 : index
    %c0_307 = arith.constant 0 : index
    %444 = vector.load %arg7[%c0_306, %c0_307] : memref<8x128xf32, #tpu.memory_space<vmem>>, vector<8x128xf32>
    tpu.vector_store %arg7[%c0_306, %c0_307], %443 {strides = array<i32>} : memref<8x128xf32, #tpu.memory_space<vmem>>, vector<8x128xf32>,
    return
  }
}

</mosaic_0001>

<bundles_post_ra>
// kernel: forward.1
= control target key start
LH: loop header
LB: loop body
LE: loop exit
PB: predicated region body
PF: predicated region fallthrough
CT: control target
= control target key end

     0   :  { %12 = vsyncpa [#allocation6], 0  ;;  %s2368_s0 = inlined_call_operand.vmem [shape: s32[8,8], index: 0, kind: input, shape index: {}]   ;;  %s2369_s1 = inlined_call_operand.hbm [shape: f32[65,32], index: 1, kind: input, shape index: {}]   ;;  %s2370_s2 = inlined_call_operand.hbm [shape: f32[32,128], index: 2, kind: input, shape index: {}]   ;;  %s2371_s3 = inlined_call_operand.hbm [shape: f32[32,128], index: 3, kind: input, shape index: {}]   ;;  %s2372_s4 = inlined_call_operand.vmem [shape: f32[1,128], index: 4, kind: input, shape index: {}]   ;;  %s2373_s5 = inlined_call_operand.hbm [shape: f32[32,128], index: 5, kind: input, shape index: {}]   ;;  %s2374_s6 = inlined_call_operand.vmem [shape: f32[1,128], index: 6, kind: input, shape index: {}]   ;;  %s2375_s7 = inlined_call_operand.vmem [shape: f32[8,128], index: 7, kind: output, shape index: {}]  }
   0x1   :  { %13 = vsyncpa [#allocation5], 0 }
   0x2   :  { %14 = vsyncpa [#allocation9], 0 }
   0x3   :  { %15 = vsyncpa [#allocation12], 0  ;;  %s22_s26 = sshll.u32 %s2368_s0, 4  ;;  %s1935_s27 = smov [#allocation8]   ;;  %s23_s26 = int_to_ptr.vmem [resolvable:$true] %s22_s26 }
   0x4   :  { %s43_s28 = sshll.u32 %s1935_s27, 4  ;;  %s44_s28 = int_to_ptr.vmem [resolvable:$true] %s43_s28 }
   0x5   :  { %s1843_s29 = scalar_lea.vmem %s44_s28, 512  ;;  %p1848_p1 = scmp.lt.s32.totalorder %s44_s28, %s44_s28 }
   0x6   :  { %p1844_p0 = scmp.ne.s32.totalorder %s44_s28, %s1843_s29  ;;  %p1849_p2 = scmp.lt.s32.totalorder %s1843_s29, %s1843_s29 }
   0x8   :  { %p1850_p3 = por %p1849_p2, %p1848_p1 }
   0xa   :  { %p1851_p4 = pnand %p1850_p3, %p1844_p0 }
   0xc   :  { %1854 = shalt.err (!%p1851_p4)
}
   0xd   :  { %s1936_s30 = smov 128   ;;  %s1937_s8 = smov 8  }
   0xe   :  { %49 = dma.hbm_to_vmem [thread:$0]  %s2370_s2, 512, %s44_s28, [#allocation9], %s1936_s30, %s1936_s30, %s1937_s8  }
   0xf   :  { %s1855_s0 = scalar_lea.vmem %s23_s26, 128  ;;  %p1860_p6 = scmp.lt.s32.totalorder %s23_s26, %s23_s26 }
  0x10   :  { %p1856_p5 = scmp.ne.s32.totalorder %s23_s26, %s1855_s0  ;;  %p1861_p7 = scmp.lt.s32.totalorder %s1855_s0, %s1855_s0 }
  0x12   :  { %p1862_p8 = por %p1861_p7, %p1860_p6 }
  0x14   :  { %p1863_p9 = pnand %p1862_p8, %p1856_p5 }
  0x16   :  { %1866 = shalt.err (!%p1863_p9)
}
  0x17   :  { %s1938_s11 = smov [#allocation4]   ;;  %s1939_s12 = smov [#allocation7]  }
  0x18   :  { %25 = dma.vmem_to_smem %s23_s26, 128, %s1938_s11, [#allocation6]  }
  0x19   :  { %s31_s13 = sshll.u32 %s1939_s12, 4  ;;  %s1940_s14 = smov [#allocation10]   ;;  %s32_s13 = int_to_ptr.vmem [resolvable:$true] %s31_s13 }
  0x1a   :  { %s55_s15 = sshll.u32 %s1940_s14, 4  ;;  %s1875_s16 = scalar_lea.vmem %s32_s13, 1152  ;;  %s56_s15 = int_to_ptr.vmem [resolvable:$true] %s55_s15 }
  0x1b   :  { %p1876_p10 = scmp.ne.s32.totalorder %s32_s13, %s1875_s16  ;;  %p1880_p11 = scmp.lt.s32.totalorder %s32_s13, %s32_s13 }
  0x1c   :  { %p1881_p12 = scmp.lt.s32.totalorder %s1875_s16, %s1875_s16 }
  0x1e   :  { %p1882_p13 = por %p1881_p12, %p1880_p11 }
  0x20   :  { %p1883_p0 = pnand %p1882_p13, %p1876_p10 }
  0x22   :  { %1886 = shalt.err (!%p1883_p0)
}
  0x23   :  { %37 = dma.hbm_to_vmem [thread:$0]  %s2369_s1, 1152, %s32_s13, [#allocation5], %s1936_s30, %s1936_s30, %s1937_s8  }
  0x24   :  { %s1895_s18 = scalar_lea.vmem %s56_s15, 512  ;;  %p1900_p2 = scmp.lt.s32.totalorder %s56_s15, %s56_s15 }
  0x25   :  { %p1896_p1 = scmp.ne.s32.totalorder %s56_s15, %s1895_s18  ;;  %p1901_p3 = scmp.lt.s32.totalorder %s1895_s18, %s1895_s18 }
  0x27   :  { %p1902_p4 = por %p1901_p3, %p1900_p2 }
  0x29   :  { %p1903_p5 = pnand %p1902_p4, %p1896_p1 }
  0x2b   :  { %1906 = shalt.err (!%p1903_p5)
}
  0x2c   :  { %61 = dma.hbm_to_vmem [thread:$0]  %s2371_s3, 512, %s56_s15, [#allocation9], %s1936_s30, %s1936_s30, %s1937_s8  }
  0x2d   :  { %s1941_s21 = smov [#allocation11]  }
  0x2e   :  { %s69_s22 = sshll.u32 %s1941_s21, 4  ;;  %s70_s22 = int_to_ptr.vmem [resolvable:$true] %s69_s22 }
  0x2f   :  { %s1915_s23 = scalar_lea.vmem %s70_s22, 512  ;;  %p1920_p7 = scmp.lt.s32.totalorder %s70_s22, %s70_s22 }
  0x30   :  { %p1916_p6 = scmp.ne.s32.totalorder %s70_s22, %s1915_s23  ;;  %p1921_p8 = scmp.lt.s32.totalorder %s1915_s23, %s1915_s23 }
  0x32   :  { %p1922_p9 = por %p1921_p8, %p1920_p7 }
  0x34   :  { %p1923_p10 = pnand %p1922_p9, %p1916_p6 }
  0x36   :  { %1926 = shalt.err (!%p1923_p10)
}
  0x37   :  { %75 = dma.hbm_to_vmem [thread:$0]  %s2373_s5, 512, %s70_s22, [#allocation12], %s1936_s30, %s1936_s30, %s1937_s8  }
  0x38   :  { %1927 = dma.done.wait [#allocation6], 128  }
  0x39   :  { %1928 = vsyncadd [#allocation6], 4294967168 }
  0x3a   :  { %1929 = dma.done.wait [#allocation5], 1152  }
  0x3b   :  { %1930 = vsyncadd [#allocation5], 4294966144 }
  0x3c   :  { %1931 = dma.done.wait [#allocation9], 1024  }
  0x3d   :  { %1932 = vsyncadd [#allocation9], 4294966272 }
  0x3e   :  { %1933 = dma.done.wait [#allocation12], 512  }
  0x3f   :  { %1934 = vsyncadd [#allocation12], 4294966784 }
  0x40   :  { %93 = sfence }
  0x41   :  { %v362_v0 = vld [vmem:[#allocation8 + $0x18] sm:$0xff]  ;;  %v361_v1 = vld [vmem:[#allocation8 + $0x10] sm:$0xff]  ;;  %s94_s3 = sld [smem:[#allocation4]]  ;;  %v1942_v3 = vmov 0.0   ;;  %v360_v5 = vld [vmem:[#allocation8 + $0x8] sm:$0xff]  ;;  %vm97_vm0 = vcmask 253952  }
  0x42   :  { %v2013_v2 = vld [vmem:[#allocation10 + $0x18] sm:$0xff]  ;;  %1637 = vmatprep.subr.mxu0 %v362_v0  ;;  %1657 = vmatprep.subr.mxu1 %v1942_v3  ;;  %v2016_v4 = vld [vmem:[#allocation10 + $0x10] sm:$0xff]  ;;  %s2018_s5 = sld [smem:[#allocation4 + $0x80]]  ;;  %v2026_v6 = vld [vmem:[#allocation10 + $0x8] sm:$0xff]  ;;  %vm1943_vm1 = vmmov 0   ;;  %vm370_vm2 = vcmask 261120  }
  0x43   :  { %1638 = vmatpush3.msra.mxu0 %v362_v0  ;;  %1658 = vmatpush3.msra.mxu1 %v2013_v2  ;;  %s2021_s25 = sld [smem:[#allocation4 + $0x100]]  ;;  %v359_v7 = vld [vmem:[#allocation8] sm:$0xff]  ;;  %v2112_v30 = vld [vmem:[%s2372_s4] ss:$0 sm:$0xff] }
  0x44   :  { %1639 = vmatprep.subr.mxu0 %v361_v1  ;;  %1659 = vmatprep.subr.mxu1 %v1942_v3  ;;  %s2024_s26 = sld [smem:[#allocation4 + $0x180]]  ;;  %v2034_v8 = vld [vmem:[#allocation10] sm:$0xff] }
  0x45   :  { %1640 = vmatpush3.msra.mxu0 %v361_v1  ;;  %1660 = vmatpush3.msra.mxu1 %v2016_v4  ;;  %s2029_s27 = sld [smem:[#allocation4 + $0x200]] }
  0x46   :  { %1641 = vmatprep.subr.mxu0 %v360_v5  ;;  %1661 = vmatprep.subr.mxu1 %v1942_v3  ;;  %s2032_s28 = sld [smem:[#allocation4 + $0x280]] }
  0x47   :  { %1642 = vmatpush3.msra.mxu0 %v360_v5  ;;  %s2036_s29 = sld [smem:[#allocation4 + $0x300]]  ;;  %1662 = vmatpush3.msra.mxu1 %v2026_v6  ;;  %s95_s30 = scalar_lea.vmem [#allocation7], %s94_s3 }
  0x48   :  { %1643 = vmatprep.subr.mxu0 %v359_v7  ;;  %v96_v9 = vld [vmem:[%s95_s30] sm:$0x1]  ;;  %s2039_s8 = sld [smem:[#allocation4 + $0x380]]  ;;  %1663 = vmatprep.subr.mxu1 %v1942_v3  ;;  %s100_s9 = scalar_lea.vmem [#allocation7], %s2018_s5 }
  0x49   :  { %1644 = vmatpush3.msra.mxu0 %v359_v7  ;;  %98 = vst.msk [vmem:[#allocation2] sm:$0x1] %vm97_vm0, %v96_v9  ;;  %v101_v10 = vld [vmem:[%s100_s9] sm:$0x1]  ;;  %s2044_s10 = sld [smem:[#allocation4 + $0x1]]  ;;  %1664 = vmatpush3.msra.mxu1 %v2034_v8  ;;  %s104_s0 = scalar_lea.vmem [#allocation7], %s2021_s25 }
  0x4a   :  { %102 = vst.msk [vmem:[#allocation2 + $0x1] sm:$0x1] %vm97_vm0, %v101_v10  ;;  %v105_v11 = vld [vmem:[%s104_s0] sm:$0x1]  ;;  %s2049_s11 = sld [smem:[#allocation4 + $0x81]]  ;;  %1665 = vmatprep.mubr.msk.f32.mxu1 %vm1943_vm1, %v1942_v3  ;;  %1668 = vmatprep.subr.mxu1 %v1942_v3  ;;  %s108_s12 = scalar_lea.vmem [#allocation7], %s2024_s26 }
  0x4b   :  { %106 = vst.msk [vmem:[#allocation2 + $0x2] sm:$0x1] %vm97_vm0, %v105_v11  ;;  %v109_v12 = vld [vmem:[%s108_s12] sm:$0x1]  ;;  %s2056_s13 = sld [smem:[#allocation4 + $0x101]]  ;;  %1666 = vmatmul.mubr.f32.vlgmr.msra.gmra.mxu1 %v1942_v3  ;;  %1679 = vmatprep.subr.mxu0 %v1942_v3  ;;  %s112_s14 = scalar_lea.vmem [#allocation7], %s2029_s27 }
  0x4c   :  { %110 = vst.msk [vmem:[#allocation2 + $0x3] sm:$0x1] %vm97_vm0, %v109_v12  ;;  %v113_v13 = vld [vmem:[%s112_s14] sm:$0x1]  ;;  %s2062_s15 = sld [smem:[#allocation4 + $0x181]]  ;;  %1669 = vmatpush3.msra.mxu1 %v2013_v2  ;;  %1676 = vmatprep.mubr.msk.f32.mxu1 %vm1943_vm1, %v1942_v3  ;;  %s116_s16 = scalar_lea.vmem [#allocation7], %s2032_s28 }
  0x4d   :  { %114 = vst.msk [vmem:[#allocation2 + $0x4] sm:$0x1] %vm97_vm0, %v113_v13  ;;  %v117_v14 = vld [vmem:[%s116_s16] sm:$0x1]  ;;  %s2069_s2 = sld [smem:[#allocation4 + $0x201]]  ;;  %1670 = vmatprep.subr.mxu1 %v1942_v3  ;;  %s120_s17 = scalar_lea.vmem [#allocation7], %s2036_s29 }
  0x4e   :  { %118 = vst.msk [vmem:[#allocation2 + $0x5] sm:$0x1] %vm97_vm0, %v117_v14  ;;  %v121_v15 = vld [vmem:[%s120_s17] sm:$0x1]  ;;  %s2074_s18 = sld [smem:[#allocation4 + $0x281]]  ;;  %1671 = vmatpush3.msra.mxu1 %v2016_v4  ;;  %s124_s19 = scalar_lea.vmem [#allocation7], %s2039_s8 }
  0x4f   :  { %122 = vst.msk [vmem:[#allocation2 + $0x6] sm:$0x1] %vm97_vm0, %v121_v15  ;;  %v125_v16 = vld [vmem:[%s124_s19] sm:$0x1]  ;;  %s1503_s20 = sld [smem:[#allocation4 + $0x301]]  ;;  %1672 = vmatprep.subr.mxu1 %v1942_v3  ;;  %s128_s21 = scalar_lea.vmem [#allocation7], %s2044_s10 }
  0x50   :  { %126 = vst.msk [vmem:[#allocation2 + $0x7] sm:$0x1] %vm97_vm0, %v125_v16  ;;  %v129_v17 = vld [vmem:[%s128_s21] sm:$0x1]  ;;  %s1504_s22 = sld [smem:[#allocation4 + $0x381]]  ;;  %1673 = vmatpush3.msra.mxu1 %v2026_v6  ;;  %s132_s23 = scalar_lea.vmem [#allocation7], %s2049_s11 }
  0x51   :  { %130 = vst.msk [vmem:[#allocation2 + $0x8] sm:$0x1] %vm97_vm0, %v129_v17  ;;  %v133_v18 = vld [vmem:[%s132_s23] sm:$0x1]  ;;  %1674 = vmatprep.subr.mxu1 %v1942_v3  ;;  %s136_s1 = scalar_lea.vmem [#allocation7], %s2056_s13  ;;  %s1944_s29 = smov 64  }
  0x52   :  { %134 = vst.msk [vmem:[#allocation2 + $0x9] sm:$0x1] %vm97_vm0, %v133_v18  ;;  %v137_v19 = vld [vmem:[%s136_s1] sm:$0x1]  ;;  %1675 = vmatpush3.msra.mxu1 %v2034_v8  ;;  %s140_s24 = scalar_lea.vmem [#allocation7], %s2062_s15  ;;  %s1945_s30 = smov 32  }
  0x53   :  { %138 = vst.msk [vmem:[#allocation2 + $0xa] sm:$0x1] %vm97_vm0, %v137_v19  ;;  %v141_v20 = vld [vmem:[%s140_s24] sm:$0x1]  ;;  %1690 = vmatprep.subr.mxu1 %v1942_v3  ;;  %s144_s3 = scalar_lea.vmem [#allocation7], %s2069_s2  ;;  %s1505_s4 = sld [smem:[#allocation4 + $0x2]] }
  0x54   :  { %142 = vst.msk [vmem:[#allocation2 + $0xb] sm:$0x1] %vm97_vm0, %v141_v20  ;;  %v145_v21 = vld [vmem:[%s144_s3] sm:$0x1]  ;;  %s148_s5 = scalar_lea.vmem [#allocation7], %s2074_s18  ;;  %s1506_s8 = sld [smem:[#allocation4 + $0x82]] }
  0x55   :  { %146 = vst.msk [vmem:[#allocation2 + $0xc] sm:$0x1] %vm97_vm0, %v145_v21  ;;  %v149_v22 = vld [vmem:[%s148_s5] sm:$0x1]  ;;  %s152_s25 = scalar_lea.vmem [#allocation7], %s1503_s20  ;;  %s1507_s9 = sld [smem:[#allocation4 + $0x102]] }
  0x56   :  { %150 = vst.msk [vmem:[#allocation2 + $0xd] sm:$0x1] %vm97_vm0, %v149_v22  ;;  %v153_v23 = vld [vmem:[%s152_s25] sm:$0x1]  ;;  %s156_s26 = scalar_lea.vmem [#allocation7], %s1504_s22  ;;  %s1508_s10 = sld [smem:[#allocation4 + $0x182]] }
  0x57   :  { %v351_v24 = vld [vmem:[#allocation2] sm:$0xff]  ;;  %154 = vst.msk [vmem:[#allocation2 + $0xe] sm:$0x1] %vm97_vm0, %v153_v23  ;;  %s1509_s0 = sld [smem:[#allocation4 + $0x202]] }
  0x58   :  { %v157_v25 = vld [vmem:[%s156_s26] sm:$0x1]  ;;  %1645 = vmatprep.mubr.msk.f32.mxu0 %vm370_vm2, %v351_v24  ;;  %s1510_s11 = sld [smem:[#allocation4 + $0x282]] }
  0x59   :  { %158 = vst.msk [vmem:[#allocation2 + $0xf] sm:$0x1] %vm97_vm0, %v157_v25  ;;  %s1511_s12 = sld [smem:[#allocation4 + $0x302]]  ;;  %s160_s13 = scalar_lea.vmem [#allocation7], %s1505_s4 }
  0x5a   :  { %v161_v62 = vld [vmem:[%s160_s13] sm:$0x1]  ;;  %s2140_s14 = sld [smem:[#allocation4 + $0x382]]  ;;  %s164_s15 = scalar_lea.vmem [#allocation7], %s1506_s8 }
  0x5b   :  { %162 = vst.msk [vmem:[#allocation2 + $0x10] sm:$0x1] %vm97_vm0, %v161_v62  ;;  %v165_v63 = vld [vmem:[%s164_s15] sm:$0x1]  ;;  %s2143_s16 = sld [smem:[#allocation4 + $0x3]]  ;;  %s168_s2 = scalar_lea.vmem [#allocation7], %s1507_s9 }
  0x5c   :  { %166 = vst.msk [vmem:[#allocation2 + $0x11] sm:$0x1] %vm97_vm0, %v165_v63  ;;  %v169_v0 = vld [vmem:[%s168_s2] sm:$0x1]  ;;  %s2146_s17 = sld [smem:[#allocation4 + $0x83]]  ;;  %s172_s18 = scalar_lea.vmem [#allocation7], %s1508_s10 }
  0x5d   :  { %170 = vst.msk [vmem:[#allocation2 + $0x12] sm:$0x1] %vm97_vm0, %v169_v0  ;;  %v173_v5 = vld [vmem:[%s172_s18] sm:$0x1]  ;;  %s1515_s19 = sld [smem:[#allocation4 + $0x103]]  ;;  %s176_s20 = scalar_lea.vmem [#allocation7], %s1509_s0 }
  0x5e   :  { %174 = vst.msk [vmem:[#allocation2 + $0x13] sm:$0x1] %vm97_vm0, %v173_v5  ;;  %v177_v7 = vld [vmem:[%s176_s20] sm:$0x1]  ;;  %s1516_s21 = sld [smem:[#allocation4 + $0x183]]  ;;  %s180_s22 = scalar_lea.vmem [#allocation7], %s1510_s11 }
  0x5f   :  { %178 = vst.msk [vmem:[#allocation2 + $0x14] sm:$0x1] %vm97_vm0, %v177_v7  ;;  %v181_v9 = vld [vmem:[%s180_s22] sm:$0x1]  ;;  %s1517_s23 = sld [smem:[#allocation4 + $0x203]]  ;;  %s184_s1 = scalar_lea.vmem [#allocation7], %s1511_s12 }
  0x60   :  { %v352_v26 = vld [vmem:[#allocation2 + $0x8] sm:$0xff]  ;;  %182 = vst.msk [vmem:[#allocation2 + $0x15] sm:$0x1] %vm97_vm0, %v181_v9  ;;  %v185_v10 = vld [vmem:[%s184_s1] sm:$0x1]  ;;  %s1518_s24 = sld [smem:[#allocation4 + $0x283]] }
  0x61   :  { %1646 = vmatmul.mubr.msk.f32.vlgmr.msra.gmra.mxu0 %vm370_vm2, %v352_v26  ;;  %186 = vst.msk [vmem:[#allocation2 + $0x16] sm:$0x1] %vm97_vm0, %v185_v10  ;;  %s188_s3 = scalar_lea.vmem [#allocation7], %s2140_s14  ;;  %s1519_s5 = sld [smem:[#allocation4 + $0x303]] }
  0x62   :  { %1680 = vmatpush3.msra.mxu0 %v2013_v2  ;;  %v189_v11 = vld [vmem:[%s188_s3] sm:$0x1]  ;;  %s192_s25 = scalar_lea.vmem [#allocation7], %s2143_s16  ;;  %s1520_s26 = sld [smem:[#allocation4 + $0x383]] }
  0x63   :  { %1681 = vmatprep.subr.mxu0 %v1942_v3  ;;  %190 = vst.msk [vmem:[#allocation2 + $0x17] sm:$0x1] %vm97_vm0, %v189_v11  ;;  %v193_v12 = vld [vmem:[%s192_s25] sm:$0x1]  ;;  %s196_s27 = scalar_lea.vmem [#allocation7], %s2146_s17  ;;  %s2159_s28 = sld [smem:[#allocation4 + $0x4]] }
  0x64   :  { %1682 = vmatpush3.msra.mxu0 %v2016_v4  ;;  %194 = vst.msk [vmem:[#allocation2 + $0x18] sm:$0x1] %vm97_vm0, %v193_v12  ;;  %v197_v13 = vld [vmem:[%s196_s27] sm:$0x1]  ;;  %s200_s4 = scalar_lea.vmem [#allocation7], %s1515_s19  ;;  %s2162_s8 = sld [smem:[#allocation4 + $0x84]] }
  0x65   :  { %1683 = vmatprep.subr.mxu0 %v1942_v3  ;;  %198 = vst.msk [vmem:[#allocation2 + $0x19] sm:$0x1] %vm97_vm0, %v197_v13  ;;  %v201_v14 = vld [vmem:[%s200_s4] sm:$0x1]  ;;  %s204_s9 = scalar_lea.vmem [#allocation7], %s1516_s21  ;;  %s2165_s10 = sld [smem:[#allocation4 + $0x104]] }
  0x66   :  { %1684 = vmatpush3.msra.mxu0 %v2026_v6  ;;  %202 = vst.msk [vmem:[#allocation2 + $0x1a] sm:$0x1] %vm97_vm0, %v201_v14  ;;  %v205_v15 = vld [vmem:[%s204_s9] sm:$0x1]  ;;  %s208_s0 = scalar_lea.vmem [#allocation7], %s1517_s23  ;;  %s2168_s11 = sld [smem:[#allocation4 + $0x184]] }
  0x67   :  { %1685 = vmatprep.subr.mxu0 %v1942_v3  ;;  %206 = vst.msk [vmem:[#allocation2 + $0x1b] sm:$0x1] %vm97_vm0, %v205_v15  ;;  %v209_v16 = vld [vmem:[%s208_s0] sm:$0x1]  ;;  %s212_s12 = scalar_lea.vmem [#allocation7], %s1518_s24  ;;  %s2171_s13 = sld [smem:[#allocation4 + $0x204]] }
  0x68   :  { %1686 = vmatpush3.msra.mxu0 %v2034_v8  ;;  %210 = vst.msk [vmem:[#allocation2 + $0x1c] sm:$0x1] %vm97_vm0, %v209_v16  ;;  %v213_v17 = vld [vmem:[%s212_s12] sm:$0x1]  ;;  %s216_s14 = scalar_lea.vmem [#allocation7], %s1519_s5  ;;  %s2174_s15 = sld [smem:[#allocation4 + $0x284]] }
  0x69   :  { %1701 = vmatprep.subr.mxu0 %v1942_v3  ;;  %214 = vst.msk [vmem:[#allocation2 + $0x1d] sm:$0x1] %vm97_vm0, %v213_v17  ;;  %v217_v18 = vld [vmem:[%s216_s14] sm:$0x1]  ;;  %s220_s16 = scalar_lea.vmem [#allocation7], %s1520_s26  ;;  %s1527_s2 = sld [smem:[#allocation4 + $0x304]] }
  0x6a   :  { %v353_v19 = vld [vmem:[#allocation2 + $0x10] sm:$0xff]  ;;  %218 = vst.msk [vmem:[#allocation2 + $0x1e] sm:$0x1] %vm97_vm0, %v217_v18  ;;  %v221_v20 = vld [vmem:[%s220_s16] sm:$0x1]  ;;  %s224_s17 = scalar_lea.vmem [#allocation7], %s2159_s28 }
  0x6b   :  { %1648 = vmatprep.mubr.msk.f32.mxu0 %vm370_vm2, %v353_v19  ;;  %222 = vst.msk [vmem:[#allocation2 + $0x1f] sm:$0x1] %vm97_vm0, %v221_v20  ;;  %v225_v21 = vld [vmem:[%s224_s17] sm:$0x1]  ;;  %s1528_s18 = sld [smem:[#allocation4 + $0x384]]  ;;  %s228_s19 = scalar_lea.vmem [#allocation7], %s2162_s8 }
  0x6c   :  { %226 = vst.msk [vmem:[#allocation2 + $0x20] sm:$0x1] %vm97_vm0, %v225_v21  ;;  %v229_v22 = vld [vmem:[%s228_s19] sm:$0x1]  ;;  %s2182_s20 = sld [smem:[#allocation4 + $0x5]]  ;;  %s232_s21 = scalar_lea.vmem [#allocation7], %s2165_s10 }
  0x6d   :  { %230 = vst.msk [vmem:[#allocation2 + $0x21] sm:$0x1] %vm97_vm0, %v229_v22  ;;  %v233_v23 = vld [vmem:[%s232_s21] sm:$0x1]  ;;  %s2186_s22 = sld [smem:[#allocation4 + $0x85]]  ;;  %s236_s23 = scalar_lea.vmem [#allocation7], %s2168_s11 }
  0x6e   :  { %234 = vst.msk [vmem:[#allocation2 + $0x22] sm:$0x1] %vm97_vm0, %v233_v23  ;;  %v237_v24 = vld [vmem:[%s236_s23] sm:$0x1]  ;;  %s2190_s1 = sld [smem:[#allocation4 + $0x105]]  ;;  %s240_s24 = scalar_lea.vmem [#allocation7], %s2171_s13 }
  0x6f   :  { %238 = vst.msk [vmem:[#allocation2 + $0x23] sm:$0x1] %vm97_vm0, %v237_v24  ;;  %v241_v25 = vld [vmem:[%s240_s24] sm:$0x1]  ;;  %s2194_s3 = sld [smem:[#allocation4 + $0x185]]  ;;  %s244_s5 = scalar_lea.vmem [#allocation7], %s2174_s15 }
  0x70   :  { %242 = vst.msk [vmem:[#allocation2 + $0x24] sm:$0x1] %vm97_vm0, %v241_v25  ;;  %v245_v26 = vld [vmem:[%s244_s5] sm:$0x1]  ;;  %s2198_s25 = sld [smem:[#allocation4 + $0x205]]  ;;  %s248_s26 = scalar_lea.vmem [#allocation7], %s1527_s2 }
  0x71   :  { %246 = vst.msk [vmem:[#allocation2 + $0x25] sm:$0x1] %vm97_vm0, %v245_v26  ;;  %s2201_s27 = sld [smem:[#allocation4 + $0x285]]  ;;  %s252_s28 = scalar_lea.vmem [#allocation7], %s1528_s18 }
  0x72   :  { %s1535_s4 = sld [smem:[#allocation4 + $0x305]]  ;;  %s256_s8 = scalar_lea.vmem [#allocation7], %s2182_s20 }
  0x73   :  { %s1536_s9 = sld [smem:[#allocation4 + $0x385]]  ;;  %s260_s10 = scalar_lea.vmem [#allocation7], %s2186_s22 }
  0x74   :  { %s2209_s0 = sld [smem:[#allocation4 + $0x6]]  ;;  %s264_s11 = scalar_lea.vmem [#allocation7], %s2190_s1 }
  0x75   :  { %s2213_s12 = sld [smem:[#allocation4 + $0x86]]  ;;  %s268_s13 = scalar_lea.vmem [#allocation7], %s2194_s3 }
  0x76   :  { %s2217_s14 = sld [smem:[#allocation4 + $0x106]]  ;;  %s272_s15 = scalar_lea.vmem [#allocation7], %s2198_s25 }
  0x77   :  { %s2221_s16 = sld [smem:[#allocation4 + $0x186]]  ;;  %s276_s2 = scalar_lea.vmem [#allocation7], %s2201_s27 }
  0x78   :  { %s2225_s17 = sld [smem:[#allocation4 + $0x206]]  ;;  %s280_s18 = scalar_lea.vmem [#allocation7], %s1535_s4 }
  0x79   :  { %s2228_s19 = sld [smem:[#allocation4 + $0x286]]  ;;  %s284_s20 = scalar_lea.vmem [#allocation7], %s1536_s9 }
  0x7a   :  { %s1543_s21 = sld [smem:[#allocation4 + $0x306]]  ;;  %s288_s22 = scalar_lea.vmem [#allocation7], %s2209_s0 }
  0x7b   :  { %s1544_s23 = sld [smem:[#allocation4 + $0x386]]  ;;  %s292_s1 = scalar_lea.vmem [#allocation7], %s2213_s12 }
  0x7c   :  { %s2236_s24 = sld [smem:[#allocation4 + $0x7]]  ;;  %s296_s3 = scalar_lea.vmem [#allocation7], %s2217_s14 }
  0x7d   :  { %s2240_s5 = sld [smem:[#allocation4 + $0x87]]  ;;  %s300_s25 = scalar_lea.vmem [#allocation7], %s2221_s16 }
  0x7e   :  { %s304_s27 = scalar_lea.vmem [#allocation7], %s2225_s17 }
  0x7f   :  { %s308_s4 = scalar_lea.vmem [#allocation7], %s2228_s19 }
  0x80   :  { %s312_s9 = scalar_lea.vmem [#allocation7], %s1543_s21 }
  0x81   :  { %s316_s0 = scalar_lea.vmem [#allocation7], %s1544_s23 }
  0x82   :  { %s320_s12 = scalar_lea.vmem [#allocation7], %s2236_s24 }
  0x83   :  { %s324_s14 = scalar_lea.vmem [#allocation7], %s2240_s5 }
 0x10b   :  { %v582_v27 = vpop.f32.mrf.mxu1 }
 0x10d   :  { %v1667_v28 = vpop.f32.mrf.mxu1 }
 0x10e   :  { %v354_v28 = vld [vmem:[#allocation2 + $0x18] sm:$0xff] }
 0x10f   :  { %1649 = vmatmul.mubr.msk.f32.gmra.mxu0 %vm370_vm2, %v354_v28 }
 0x121   :  { %v1647_v29 = vpop.f32.mrf.mxu0 }
 0x122   :  { %v467_v48 = vadd.f32 %v1647_v29, %v2112_v30  ;;  %v253_v29 = vld [vmem:[%s252_s28] sm:$0x1]  ;;  %s1548_s28 = sld [smem:[#allocation4 + $0x187]] }
 0x123   :  { %v461_v31 = vpop.f32.mrf.mxu0  ;;  %254 = vst.msk [vmem:[#allocation2 + $0x27] sm:$0x1] %vm97_vm0, %v253_v29 }
 0x124   :  { %v462_v32 = vadd.f32 %v2112_v30, %v461_v31  ;;  %v257_v31 = vld [vmem:[%s256_s8] sm:$0x1]  ;;  %s1549_s8 = sld [smem:[#allocation4 + $0x207]] }
 0x125   :  { %258 = vst.msk [vmem:[#allocation2 + $0x28] sm:$0x1] %vm97_vm0, %v257_v31 }
 0x126   :  { %v586_v33 = vadd.f32 %v582_v27, %v462_v32  ;;  %v249_v27 = vld [vmem:[%s248_s26] sm:$0x1]  ;;  %s1547_s26 = sld [smem:[#allocation4 + $0x107]] }
 0x127   :  { %250 = vst.msk [vmem:[#allocation2 + $0x26] sm:$0x1] %vm97_vm0, %v249_v27  ;;  %v261_v32 = vld [vmem:[%s260_s10] sm:$0x1]  ;;  %s1550_s10 = sld [smem:[#allocation4 + $0x287]] }
 0x128   :  { %1767 = vtanh.f32 %v586_v33  ;;  %v1562_v35 = vmul.f32 -1.442695, %v586_v33  ;;  %262 = vst.msk [vmem:[#allocation2 + $0x29] sm:$0x1] %vm97_vm0, %v261_v32  ;;  %v265_v33 = vld [vmem:[%s264_s11] sm:$0x1] }
 0x129   :  { %266 = vst.msk [vmem:[#allocation2 + $0x2a] sm:$0x1] %vm97_vm0, %v265_v33  ;;  %s1551_s11 = sld [smem:[#allocation4 + $0x307]]  ;;  %s332_s16 = scalar_lea.vmem [#allocation7], %s1548_s28 }
 0x12a   :  { %1769 = vpow2.f32 %v1562_v35  ;;  %v273_v35 = vld [vmem:[%s272_s15] sm:$0x1] }
 0x12b   :  { %274 = vst.msk [vmem:[#allocation2 + $0x2c] sm:$0x1] %vm97_vm0, %v273_v35 }
 0x12c   :  { %s328_s15 = scalar_lea.vmem [#allocation7], %s1547_s26 }
 0x12d   :  { %s340_s17 = scalar_lea.vmem [#allocation7], %s1550_s10 }
 0x135   :  { %v1768_v34 = vpop.eup %1767 }
 0x136   :  { %596 = vrot.lane.b32.xlu0 %v1768_v34, %s1944_s29  ;;  %v269_v34 = vld [vmem:[%s268_s13] sm:$0x1]  ;;  %s1552_s13 = sld [smem:[#allocation4 + $0x387]] }
 0x137   :  { %v1770_v36 = vpop.eup %1769  ;;  %270 = vst.msk [vmem:[#allocation2 + $0x2b] sm:$0x1] %vm97_vm0, %v269_v34 }
 0x138   :  { %v590_v37 = vadd.f32 1.0, %v1770_v36  ;;  %v277_v36 = vld [vmem:[%s276_s2] sm:$0x1]  ;;  %s336_s2 = scalar_lea.vmem [#allocation7], %s1549_s8 }
 0x139   :  { %278 = vst.msk [vmem:[#allocation2 + $0x2d] sm:$0x1] %vm97_vm0, %v277_v36 }
 0x13a   :  { %1771 = vrcp.f32 %v590_v37  ;;  %v281_v37 = vld [vmem:[%s280_s18] sm:$0x1]  ;;  %s344_s18 = scalar_lea.vmem [#allocation7], %s1551_s11 }
 0x13b   :  { %282 = vst.msk [vmem:[#allocation2 + $0x2e] sm:$0x1] %vm97_vm0, %v281_v37 }
 0x13c   :  { %s348_s19 = scalar_lea.vmem [#allocation7], %s1552_s13 }
 0x147   :  { %v1772_v38 = vpop.eup %1771 }
 0x148   :  { %v594_v41 = vmul.f32 0.0, %v1772_v38 }
 0x1a8   :  { %v597_v39 = vpop.permute.xlu0 %596 }
 0x1a9   :  { %v599_v40 = vmul.f32 %v1772_v38, %v597_v39  ;;  %v285_v39 = vld [vmem:[%s284_s20] sm:$0x1] }
 0x1aa   :  { %286 = vst.msk [vmem:[#allocation2 + $0x2f] sm:$0x1] %vm97_vm0, %v285_v39 }
 0x1ab   :  { %601 = vrot.lane.b32.xlu0 %v599_v40, %s1945_s30  ;;  %v289_v40 = vld [vmem:[%s288_s22] sm:$0x1] }
 0x1ac   :  { %290 = vst.msk [vmem:[#allocation2 + $0x30] sm:$0x1] %vm97_vm0, %v289_v40 }
 0x21d   :  { %v602_v42 = vpop.permute.xlu0 %601 }
 0x21e   :  { %v604_v43 = vadd.f32 %v602_v42, %v594_v41  ;;  %v293_v41 = vld [vmem:[%s292_s1] sm:$0x1] }
 0x21f   :  { %294 = vst.msk [vmem:[#allocation2 + $0x31] sm:$0x1] %vm97_vm0, %v293_v41  ;;  %v297_v42 = vld [vmem:[%s296_s3] sm:$0x1] }
 0x220   :  { %1773 = vtanh.f32 %v604_v43  ;;  %298 = vst.msk [vmem:[#allocation2 + $0x32] sm:$0x1] %vm97_vm0, %v297_v42 }
 0x22d   :  { %v1774_v44 = vpop.eup %1773 }
 0x22e   :  { %607 = vrot.lane.b32.xlu1 %v1774_v44, %s1944_s29  ;;  %v305_v44 = vld [vmem:[%s304_s27] sm:$0x1] }
 0x22f   :  { %306 = vst.msk [vmem:[#allocation2 + $0x34] sm:$0x1] %vm97_vm0, %v305_v44 }
 0x2a0   :  { %v608_v45 = vpop.permute.xlu1 %607 }
 0x2a1   :  { %v610_v46 = vmul.f32 %v1772_v38, %v608_v45  ;;  %v355_v38 = vld [vmem:[#allocation2 + $0x20] sm:$0xff] }
 0x2a2   :  { %1651 = vmatprep.mubr.msk.f32.mxu0 %vm370_vm2, %v355_v38  ;;  %v309_v45 = vld [vmem:[%s308_s4] sm:$0x1] }
 0x2a3   :  { %614 = vrot.lane.b32.xlu1 %v610_v46, %s1945_s30  ;;  %310 = vst.msk [vmem:[#allocation2 + $0x35] sm:$0x1] %vm97_vm0, %v309_v45  ;;  %v313_v46 = vld [vmem:[%s312_s9] sm:$0x1] }
 0x2a4   :  { %314 = vst.msk [vmem:[#allocation2 + $0x36] sm:$0x1] %vm97_vm0, %v313_v46 }
 0x315   :  { %v615_v47 = vpop.permute.xlu1 %614 }
 0x316   :  { %1677 = vmatmul.mubr.msk.f32.vlgmr.msra.gmra.mxu1 %vm370_vm2, %v615_v47  ;;  %v356_v47 = vld [vmem:[#allocation2 + $0x28] sm:$0xff] }
 0x317   :  { %1691 = vmatpush3.msra.mxu1 %v2013_v2  ;;  %1698 = vmatprep.mubr.msk.f32.mxu1 %vm1943_vm1, %v1942_v3 }
 0x318   :  { %1692 = vmatprep.subr.mxu1 %v1942_v3  ;;  %1652 = vmatmul.mubr.msk.f32.gmra.mxu0 %vm370_vm2, %v356_v47 }
 0x319   :  { %1693 = vmatpush3.msra.mxu1 %v2016_v4 }
 0x31a   :  { %1694 = vmatprep.subr.mxu1 %v1942_v3 }
 0x31b   :  { %1695 = vmatpush3.msra.mxu1 %v2026_v6 }
 0x31c   :  { %1696 = vmatprep.subr.mxu1 %v1942_v3 }
 0x31d   :  { %1697 = vmatpush3.msra.mxu1 %v2034_v8 }
 0x31e   :  { %1712 = vmatprep.subr.mxu1 %v1942_v3 }
 0x3d6   :  { %v684_v49 = vpop.f32.mrf.mxu1 }
 0x3d7   :  { %v688_v50 = vadd.f32 %v684_v49, %v467_v48  ;;  %v317_v48 = vld [vmem:[%s316_s0] sm:$0x1] }
 0x3d8   :  { %v1678_v51 = vpop.f32.mrf.mxu1  ;;  %318 = vst.msk [vmem:[#allocation2 + $0x37] sm:$0x1] %vm97_vm0, %v317_v48  ;;  %v321_v49 = vld [vmem:[%s320_s12] sm:$0x1] }
 0x3d9   :  { %1775 = vtanh.f32 %v688_v50  ;;  %v1564_v53 = vmul.f32 -1.442695, %v688_v50  ;;  %322 = vst.msk [vmem:[#allocation2 + $0x38] sm:$0x1] %vm97_vm0, %v321_v49  ;;  %v325_v50 = vld [vmem:[%s324_s14] sm:$0x1] }
 0x3da   :  { %326 = vst.msk [vmem:[#allocation2 + $0x39] sm:$0x1] %vm97_vm0, %v325_v50  ;;  %v329_v51 = vld [vmem:[%s328_s15] sm:$0x1] }
 0x3db   :  { %1777 = vpow2.f32 %v1564_v53  ;;  %330 = vst.msk [vmem:[#allocation2 + $0x3a] sm:$0x1] %vm97_vm0, %v329_v51  ;;  %v337_v53 = vld [vmem:[%s336_s2] sm:$0x1] }
 0x3dc   :  { %338 = vst.msk [vmem:[#allocation2 + $0x3c] sm:$0x1] %vm97_vm0, %v337_v53 }
 0x3e6   :  { %v1776_v52 = vpop.eup %1775 }
 0x3e7   :  { %698 = vrot.lane.b32.xlu0 %v1776_v52, %s1944_s29  ;;  %v333_v52 = vld [vmem:[%s332_s16] sm:$0x1] }
 0x3e8   :  { %v1778_v54 = vpop.eup %1777  ;;  %334 = vst.msk [vmem:[#allocation2 + $0x3b] sm:$0x1] %vm97_vm0, %v333_v52 }
 0x3e9   :  { %v692_v55 = vadd.f32 1.0, %v1778_v54  ;;  %v341_v54 = vld [vmem:[%s340_s17] sm:$0x1] }
 0x3ea   :  { %342 = vst.msk [vmem:[#allocation2 + $0x3d] sm:$0x1] %vm97_vm0, %v341_v54 }
 0x3eb   :  { %1779 = vrcp.f32 %v692_v55  ;;  %v345_v55 = vld [vmem:[%s344_s18] sm:$0x1] }
 0x3ec   :  { %346 = vst.msk [vmem:[#allocation2 + $0x3e] sm:$0x1] %vm97_vm0, %v345_v55 }
 0x3f8   :  { %v2132_v56 = vpop.eup %1779 }
 0x3f9   :  { %v696_v59 = vmul.f32 %v2132_v56, %v604_v43  ;;  %v301_v43 = vld [vmem:[%s300_s25] sm:$0x1] }
 0x3fa   :  { %302 = vst.msk [vmem:[#allocation2 + $0x33] sm:$0x1] %vm97_vm0, %v301_v43 }
 0x459   :  { %v699_v57 = vpop.permute.xlu0 %698 }
 0x45a   :  { %v701_v58 = vmul.f32 %v2132_v56, %v699_v57  ;;  %v357_v57 = vld [vmem:[#allocation2 + $0x30] sm:$0xff] }
 0x45b   :  { %1654 = vmatprep.mubr.msk.f32.mxu0 %vm370_vm2, %v357_v57 }
 0x45c   :  { %703 = vrot.lane.b32.xlu1 %v701_v58, %s1945_s30  ;;  %v349_v58 = vld [vmem:[%s348_s19] sm:$0x1] }
 0x45d   :  { %350 = vst.msk [vmem:[#allocation2 + $0x3f] sm:$0x1] %vm97_vm0, %v349_v58 }
 0x4ce   :  { %v704_v60 = vpop.permute.xlu1 %703 }
 0x4cf   :  { %v2137_v61 = vadd.f32 %v704_v60, %v696_v59  ;;  %v358_v59 = vld [vmem:[#allocation2 + $0x38] sm:$0xff] }
 0x4d0   :  { %1655 = vmatmul.mubr.msk.f32.gmra.mxu0 %vm370_vm2, %v358_v59 }
 0x4d1   :  { %1781 = vtanh.f32 %v2137_v61  ;;  %1687 = vmatprep.mubr.msk.f32.mxu0 %vm1943_vm1, %v1942_v3 }
 0x4de   :  { %v1782_v1 = vpop.eup %1781 }
 0x4df   :  { %709 = vrot.lane.b32.xlu0 %v1782_v1, %s1944_s29 }
 0x551   :  { %v710_v60 = vpop.permute.xlu0 %709 }
 0x552   :  { %v712_v62 = vmul.f32 %v2132_v56, %v710_v60  ;;  %v1650_v56 = vpop.f32.mrf.mxu0 }
 0x554   :  { %716 = vrot.lane.b32.xlu1 %v712_v62, %s1945_s30  ;;  %v471_v0 = vpop.f32.mrf.mxu0 }
 0x555   :  { %v472_v10 = vadd.f32 %v2112_v30, %v471_v0 }
 0x556   :  { %v2279_v1 = vpop.f32.mrf.mxu0 }
 0x558   :  { %v2281_v5 = vpop.f32.mrf.mxu0 }
 0x559   :  { %v482_v46 = vadd.f32 %v2112_v30, %v2281_v5  ;;  %v487_v5 = vadd.f32 %v2279_v1, %v2112_v30 }
 0x590   :  { %v2283_v7 = vpop.f32.mrf.mxu0 }
 0x592   :  { %v2285_v9 = vpop.f32.mrf.mxu0 }
 0x5c6   :  { %v717_v63 = vpop.permute.xlu1 %716 }
 0x5c7   :  { %1688 = vmatmul.mubr.msk.f32.vlgmr.msra.gmra.mxu0 %vm370_vm2, %v717_v63 }
 0x5c8   :  { %1702 = vmatpush3.msra.mxu0 %v2013_v2  ;;  %1709 = vmatprep.mubr.msk.f32.mxu0 %vm1943_vm1, %v1942_v3 }
 0x5c9   :  { %1703 = vmatprep.subr.mxu0 %v1942_v3 }
 0x5ca   :  { %1704 = vmatpush3.msra.mxu0 %v2016_v4 }
 0x5cb   :  { %1705 = vmatprep.subr.mxu0 %v1942_v3 }
 0x5cc   :  { %1706 = vmatpush3.msra.mxu0 %v2026_v6 }
 0x5cd   :  { %1707 = vmatprep.subr.mxu0 %v1942_v3 }
 0x5ce   :  { %1708 = vmatpush3.msra.mxu0 %v2034_v8 }
 0x5cf   :  { %1723 = vmatprep.subr.mxu0 %v1942_v3 }
 0x687   :  { %v786_v11 = vpop.f32.mrf.mxu0 }
 0x688   :  { %v790_v12 = vadd.f32 %v786_v11, %v472_v10 }
 0x689   :  { %v1689_v13 = vpop.f32.mrf.mxu0 }
 0x68a   :  { %1783 = vtanh.f32 %v790_v12  ;;  %v1566_v15 = vmul.f32 -1.442695, %v790_v12 }
 0x68c   :  { %1785 = vpow2.f32 %v1566_v15 }
 0x697   :  { %v1784_v14 = vpop.eup %1783 }
 0x698   :  { %800 = vrot.lane.b32.xlu0 %v1784_v14, %s1944_s29 }
 0x699   :  { %v1786_v16 = vpop.eup %1785 }
 0x69a   :  { %v794_v17 = vadd.f32 1.0, %v1786_v16 }
 0x69c   :  { %1787 = vrcp.f32 %v794_v17 }
 0x6a9   :  { %v1788_v18 = vpop.eup %1787 }
 0x6aa   :  { %v798_v21 = vmul.f32 %v1788_v18, %v2137_v61  ;;  %v477_v61 = vadd.f32 %v1650_v56, %v2112_v30 }
 0x70a   :  { %v801_v19 = vpop.permute.xlu0 %800 }
 0x70b   :  { %v803_v20 = vmul.f32 %v1788_v18, %v801_v19 }
 0x70d   :  { %805 = vrot.lane.b32.xlu1 %v803_v20, %s1945_s30 }
 0x77f   :  { %v806_v22 = vpop.permute.xlu1 %805 }
 0x780   :  { %v808_v23 = vadd.f32 %v806_v22, %v798_v21  ;;  %v492_v22 = vadd.f32 %v2112_v30, %v2285_v9 }
 0x782   :  { %1789 = vtanh.f32 %v808_v23 }
 0x78f   :  { %v1790_v24 = vpop.eup %1789 }
 0x790   :  { %811 = vrot.lane.b32.xlu0 %v1790_v24, %s1944_s29 }
 0x802   :  { %v812_v25 = vpop.permute.xlu0 %811 }
 0x803   :  { %v814_v26 = vmul.f32 %v1788_v18, %v812_v25 }
 0x805   :  { %818 = vrot.lane.b32.xlu1 %v814_v26, %s1945_s30 }
 0x877   :  { %v819_v27 = vpop.permute.xlu1 %818 }
 0x878   :  { %1699 = vmatmul.mubr.msk.f32.vlgmr.msra.gmra.mxu1 %vm370_vm2, %v819_v27 }
 0x879   :  { %1713 = vmatpush3.msra.mxu1 %v2013_v2  ;;  %1720 = vmatprep.mubr.msk.f32.mxu1 %vm1943_vm1, %v1942_v3 }
 0x87a   :  { %1714 = vmatprep.subr.mxu1 %v1942_v3 }
 0x87b   :  { %1715 = vmatpush3.msra.mxu1 %v2016_v4 }
 0x87c   :  { %1716 = vmatprep.subr.mxu1 %v1942_v3 }
 0x87d   :  { %1717 = vmatpush3.msra.mxu1 %v2026_v6 }
 0x87e   :  { %1718 = vmatprep.subr.mxu1 %v1942_v3 }
 0x87f   :  { %1719 = vmatpush3.msra.mxu1 %v2034_v8 }
 0x880   :  { %1734 = vmatprep.subr.mxu1 %v1942_v3 }
 0x938   :  { %v888_v28 = vpop.f32.mrf.mxu1 }
 0x939   :  { %v892_v29 = vadd.f32 %v888_v28, %v477_v61 }
 0x93a   :  { %v1700_v31 = vpop.f32.mrf.mxu1 }
 0x93b   :  { %1791 = vtanh.f32 %v892_v29  ;;  %v1568_v33 = vmul.f32 -1.442695, %v892_v29 }
 0x93d   :  { %1793 = vpow2.f32 %v1568_v33 }
 0x948   :  { %v1792_v32 = vpop.eup %1791 }
 0x949   :  { %902 = vrot.lane.b32.xlu0 %v1792_v32, %s1944_s29 }
 0x94a   :  { %v1794_v34 = vpop.eup %1793 }
 0x94b   :  { %v896_v35 = vadd.f32 1.0, %v1794_v34 }
 0x94d   :  { %1795 = vrcp.f32 %v896_v35 }
 0x95a   :  { %v1796_v36 = vpop.eup %1795 }
 0x95b   :  { %v900_v39 = vmul.f32 %v1796_v36, %v808_v23 }
 0x9bb   :  { %v903_v37 = vpop.permute.xlu0 %902 }
 0x9bc   :  { %v905_v38 = vmul.f32 %v1796_v36, %v903_v37 }
 0x9be   :  { %907 = vrot.lane.b32.xlu1 %v905_v38, %s1945_s30 }
 0xa30   :  { %v908_v40 = vpop.permute.xlu1 %907 }
 0xa31   :  { %v910_v41 = vadd.f32 %v908_v40, %v900_v39  ;;  %v497_v39 = vadd.f32 %v2283_v7, %v2112_v30  ;;  %v1328_v7 = vld [vmem:[#allocation11 + $0x18] sm:$0xff] }
 0xa33   :  { %1797 = vtanh.f32 %v910_v41 }
 0xa40   :  { %v1798_v42 = vpop.eup %1797 }
 0xa41   :  { %913 = vrot.lane.b32.xlu0 %v1798_v42, %s1944_s29 }
 0xab3   :  { %v914_v43 = vpop.permute.xlu0 %913 }
 0xab4   :  { %v916_v44 = vmul.f32 %v1796_v36, %v914_v43 }
 0xab6   :  { %920 = vrot.lane.b32.xlu1 %v916_v44, %s1945_s30 }
 0xb28   :  { %v921_v45 = vpop.permute.xlu1 %920 }
 0xb29   :  { %1710 = vmatmul.mubr.msk.f32.vlgmr.msra.gmra.mxu0 %vm370_vm2, %v921_v45 }
 0xb2a   :  { %1724 = vmatpush3.msra.mxu0 %v2013_v2  ;;  %1731 = vmatprep.mubr.msk.f32.mxu0 %vm1943_vm1, %v1942_v3 }
 0xb2b   :  { %1725 = vmatprep.subr.mxu0 %v1942_v3 }
 0xb2c   :  { %1726 = vmatpush3.msra.mxu0 %v2016_v4 }
 0xb2d   :  { %1727 = vmatprep.subr.mxu0 %v1942_v3 }
 0xb2e   :  { %1728 = vmatpush3.msra.mxu0 %v2026_v6 }
 0xb2f   :  { %1729 = vmatprep.subr.mxu0 %v1942_v3 }
 0xb30   :  { %1730 = vmatpush3.msra.mxu0 %v2034_v8 }
 0xb31   :  { %1745 = vmatprep.subr.mxu0 %v1942_v3 }
 0xbe9   :  { %v990_v47 = vpop.f32.mrf.mxu0 }
 0xbea   :  { %v994_v48 = vadd.f32 %v990_v47, %v482_v46 }
 0xbeb   :  { %v1711_v49 = vpop.f32.mrf.mxu0 }
 0xbec   :  { %1799 = vtanh.f32 %v994_v48  ;;  %v1570_v51 = vmul.f32 -1.442695, %v994_v48 }
 0xbee   :  { %1801 = vpow2.f32 %v1570_v51 }
 0xbf9   :  { %v1800_v50 = vpop.eup %1799 }
 0xbfa   :  { %1004 = vrot.lane.b32.xlu0 %v1800_v50, %s1944_s29 }
 0xbfb   :  { %v1802_v52 = vpop.eup %1801 }
 0xbfc   :  { %v998_v53 = vadd.f32 1.0, %v1802_v52  ;;  %v1327_v52 = vld [vmem:[#allocation11 + $0x10] sm:$0xff] }
 0xbfe   :  { %1803 = vrcp.f32 %v998_v53  ;;  %v1326_v53 = vld [vmem:[#allocation11 + $0x8] sm:$0xff] }
 0xc0b   :  { %v1804_v54 = vpop.eup %1803 }
 0xc0c   :  { %v1002_v58 = vmul.f32 %v1804_v54, %v910_v41 }
 0xc6c   :  { %v1005_v55 = vpop.permute.xlu0 %1004 }
 0xc6d   :  { %v1007_v57 = vmul.f32 %v1804_v54, %v1005_v55 }
 0xc6f   :  { %1009 = vrot.lane.b32.xlu1 %v1007_v57, %s1945_s30 }
 0xce1   :  { %v1010_v59 = vpop.permute.xlu1 %1009 }
 0xce2   :  { %v1012_v60 = vadd.f32 %v1010_v59, %v1002_v58 }
 0xce4   :  { %1805 = vtanh.f32 %v1012_v60 }
 0xcf1   :  { %v1806_v62 = vpop.eup %1805 }
 0xcf2   :  { %1015 = vrot.lane.b32.xlu0 %v1806_v62, %s1944_s29 }
 0xd64   :  { %v1016_v63 = vpop.permute.xlu0 %1015 }
 0xd65   :  { %v1018_v56 = vmul.f32 %v1804_v54, %v1016_v63  ;;  %v1325_v54 = vld [vmem:[#allocation11] sm:$0xff] }
 0xd67   :  { %1022 = vrot.lane.b32.xlu1 %v1018_v56, %s1945_s30 }
 0xdd9   :  { %v1023_v0 = vpop.permute.xlu1 %1022 }
 0xdda   :  { %1721 = vmatmul.mubr.msk.f32.vlgmr.msra.gmra.mxu1 %vm370_vm2, %v1023_v0 }
 0xddb   :  { %1735 = vmatpush3.msra.mxu1 %v2013_v2  ;;  %1742 = vmatprep.mubr.msk.f32.mxu1 %vm1943_vm1, %v1942_v3 }
 0xddc   :  { %1736 = vmatprep.subr.mxu1 %v1942_v3 }
 0xddd   :  { %1737 = vmatpush3.msra.mxu1 %v2016_v4 }
 0xdde   :  { %1738 = vmatprep.subr.mxu1 %v1942_v3 }
 0xddf   :  { %1739 = vmatpush3.msra.mxu1 %v2026_v6 }
 0xde0   :  { %1740 = vmatprep.subr.mxu1 %v1942_v3 }
 0xde1   :  { %1741 = vmatpush3.msra.mxu1 %v2034_v8 }
 0xe9a   :  { %v1092_v10 = vpop.f32.mrf.mxu1 }
 0xe9b   :  { %v1096_v2 = vadd.f32 %v1092_v10, %v487_v5 }
 0xe9c   :  { %v1722_v11 = vpop.f32.mrf.mxu1 }
 0xe9d   :  { %1807 = vtanh.f32 %v1096_v2  ;;  %v1572_v13 = vmul.f32 -1.442695, %v1096_v2 }
 0xe9f   :  { %1809 = vpow2.f32 %v1572_v13 }
 0xeaa   :  { %v1808_v12 = vpop.eup %1807 }
 0xeab   :  { %1106 = vrot.lane.b32.xlu0 %v1808_v12, %s1944_s29 }
 0xeac   :  { %v1810_v4 = vpop.eup %1809 }
 0xead   :  { %v1100_v14 = vadd.f32 1.0, %v1810_v4 }
 0xeaf   :  { %1811 = vrcp.f32 %v1100_v14 }
 0xebc   :  { %v1812_v6 = vpop.eup %1811 }
 0xebd   :  { %v1104_v8 = vmul.f32 %v1812_v6, %v1012_v60  ;;  %v1577_v60 = vld [vmem:[%s2374_s6] ss:$0 sm:$0xff] }
 0xf1d   :  { %v1107_v15 = vpop.permute.xlu0 %1106 }
 0xf1e   :  { %v1109_v16 = vmul.f32 %v1812_v6, %v1107_v15 }
 0xf20   :  { %1111 = vrot.lane.b32.xlu1 %v1109_v16, %s1945_s30 }
 0xf92   :  { %v1112_v17 = vpop.permute.xlu1 %1111 }
 0xf93   :  { %v1114_v1 = vadd.f32 %v1112_v17, %v1104_v8 }
 0xf95   :  { %1813 = vtanh.f32 %v1114_v1 }
 0xfa2   :  { %v1814_v18 = vpop.eup %1813 }
 0xfa3   :  { %1117 = vrot.lane.b32.xlu0 %v1814_v18, %s1944_s29 }
0x1015   :  { %v1118_v19 = vpop.permute.xlu0 %1117 }
0x1016   :  { %v1120_v20 = vmul.f32 %v1812_v6, %v1118_v19 }
0x1018   :  { %1124 = vrot.lane.b32.xlu1 %v1120_v20, %s1945_s30 }
0x108a   :  { %v1125_v21 = vpop.permute.xlu1 %1124 }
0x108b   :  { %1732 = vmatmul.mubr.msk.f32.vlgmr.msra.gmra.mxu0 %vm370_vm2, %v1125_v21 }
0x108c   :  { %1753 = vmatprep.mubr.msk.f32.mxu0 %vm1943_vm1, %v1942_v3  ;;  %1746 = vmatpush3.msra.mxu0 %v1328_v7 }
0x108d   :  { %1747 = vmatprep.subr.mxu0 %v1942_v3 }
0x108e   :  { %1748 = vmatpush3.msra.mxu0 %v1327_v52 }
0x108f   :  { %1749 = vmatprep.subr.mxu0 %v1942_v3 }
0x1090   :  { %1750 = vmatpush3.msra.mxu0 %v1326_v53 }
0x1091   :  { %1751 = vmatprep.subr.mxu0 %v1942_v3 }
0x1092   :  { %1752 = vmatpush3.msra.mxu0 %v1325_v54 }
0x114b   :  { %v1194_v23 = vpop.f32.mrf.mxu0 }
0x114c   :  { %v1198_v24 = vadd.f32 %v1194_v23, %v492_v22 }
0x114d   :  { %v1733_v25 = vpop.f32.mrf.mxu0 }
0x114e   :  { %1815 = vtanh.f32 %v1198_v24  ;;  %v1574_v27 = vmul.f32 -1.442695, %v1198_v24 }
0x1150   :  { %1817 = vpow2.f32 %v1574_v27 }
0x115b   :  { %v1816_v26 = vpop.eup %1815 }
0x115c   :  { %1208 = vrot.lane.b32.xlu0 %v1816_v26, %s1944_s29 }
0x115d   :  { %v1818_v61 = vpop.eup %1817 }
0x115e   :  { %v1202_v28 = vadd.f32 1.0, %v1818_v61 }
0x1160   :  { %1819 = vrcp.f32 %v1202_v28 }
0x116d   :  { %v1820_v29 = vpop.eup %1819 }
0x116e   :  { %v1206_v33 = vmul.f32 %v1820_v29, %v1114_v1 }
0x11ce   :  { %v1209_v31 = vpop.permute.xlu0 %1208 }
0x11cf   :  { %v1211_v32 = vmul.f32 %v1820_v29, %v1209_v31 }
0x11d1   :  { %1213 = vrot.lane.b32.xlu1 %v1211_v32, %s1945_s30 }
0x1243   :  { %v1214_v34 = vpop.permute.xlu1 %1213 }
0x1244   :  { %v1216_v9 = vadd.f32 %v1214_v34, %v1206_v33 }
0x1246   :  { %1821 = vtanh.f32 %v1216_v9 }
0x1253   :  { %v1822_v35 = vpop.eup %1821 }
0x1254   :  { %1219 = vrot.lane.b32.xlu0 %v1822_v35, %s1944_s29 }
0x12c6   :  { %v1220_v36 = vpop.permute.xlu0 %1219 }
0x12c7   :  { %v1222_v37 = vmul.f32 %v1820_v29, %v1220_v36 }
0x12c9   :  { %1226 = vrot.lane.b32.xlu1 %v1222_v37, %s1945_s30 }
0x133b   :  { %v1227_v38 = vpop.permute.xlu1 %1226 }
0x133c   :  { %1743 = vmatmul.mubr.msk.f32.vlgmr.msra.gmra.mxu1 %vm370_vm2, %v1227_v38 }
0x13fc   :  { %v1296_v40 = vpop.f32.mrf.mxu1 }
0x13fd   :  { %v1300_v41 = vadd.f32 %v1296_v40, %v497_v39 }
0x13fe   :  { %v1744_v42 = vpop.f32.mrf.mxu1 }
0x13ff   :  { %1823 = vtanh.f32 %v1300_v41  ;;  %v1576_v44 = vmul.f32 -1.442695, %v1300_v41 }
0x1401   :  { %1825 = vpow2.f32 %v1576_v44 }
0x140c   :  { %v1824_v43 = vpop.eup %1823 }
0x140d   :  { %1310 = vrot.lane.b32.xlu0 %v1824_v43, %s1944_s29 }
0x140e   :  { %v1826_v45 = vpop.eup %1825 }
0x140f   :  { %v1304_v46 = vadd.f32 1.0, %v1826_v45 }
0x1411   :  { %1827 = vrcp.f32 %v1304_v46 }
0x141e   :  { %v1828_v47 = vpop.eup %1827 }
0x141f   :  { %v1308_v50 = vmul.f32 %v1828_v47, %v1216_v9 }
0x147f   :  { %v1311_v48 = vpop.permute.xlu0 %1310 }
0x1480   :  { %v1313_v49 = vmul.f32 %v1828_v47, %v1311_v48 }
0x1482   :  { %1315 = vrot.lane.b32.xlu1 %v1313_v49, %s1945_s30 }
0x14f4   :  { %v1316_v51 = vpop.permute.xlu1 %1315 }
0x14f5   :  { %v1318_v30 = vadd.f32 %v1316_v51, %v1308_v50 }
0x14f7   :  { %1829 = vtanh.f32 %v1318_v30 }
0x1504   :  { %v1830_v55 = vpop.eup %1829 }
0x1505   :  { %1321 = vrot.lane.b32.xlu0 %v1830_v55, %s1944_s29 }
0x1577   :  { %v1322_v57 = vpop.permute.xlu0 %1321 }
0x1578   :  { %v1324_v58 = vmul.f32 %v1828_v47, %v1322_v57 }
0x157a   :  { %1337 = vrot.lane.b32.xlu1 %v1324_v58, %s1945_s30 }
0x15ec   :  { %v1338_v59 = vpop.permute.xlu1 %1337 }
0x15ed   :  { %1754 = vmatmul.mubr.msk.f32.vlgmr.msra.gmra.mxu0 %vm370_vm2, %v1338_v59 }
0x16ad   :  { %v1407_v62 = vpop.f32.mrf.mxu0 }
0x16ae   :  { %v1408_v63 = vadd.f32 %v1577_v60, %v1407_v62 }
0x16af   :  { %v1755_v56 = vpop.f32.mrf.mxu0 }
0x16b0   :  { %v1579_v0 = vmul.f32 -1.442695, %v1408_v63 }
0x16b2   :  { %1831 = vpow2.f32 %v1579_v0 }
0x16bf   :  { %v1832_v3 = vpop.eup %1831 }
0x16c0   :  { %v1414_v5 = vadd.f32 1.0, %v1832_v3 }
0x16c2   :  { %1833 = vrcp.f32 %v1414_v5 }
0x16cf   :  { %v1834_v10 = vpop.eup %1833 }
0x16d0   :  { %1417 = vst [vmem:[%s2375_s7] sm:$0xff] %v1834_v10 }
0x16d1   :  { %1422 = vsyncpa [#allocation5], 1 }
0x16d2   :  { %1423 = vsyncpa [#allocation9], 1 }
0x16d3   :  { %1424 = vsyncpa [#allocation12], 1 }
0x16d4   :  { %1425 = vsyncpa [#allocation6], 1 }

</bundles_post_ra>
